<compile_context>
chip_gen: v7x
topology: tpu7x:2x2x1
jax: 0.10.0
libtpu: 0.0.40
codegen_flags: <defaults>
</compile_context>

<pallas_src>
import jax
import jax.numpy as jnp
from jax.experimental import pallas as pl
from jax.experimental.pallas import tpu as pltpu

HIDDEN = 1024
OUT_PAD = 128  # width-1 logit head broadcast into a full 128-lane slab


def _round_up(x, m):
    return ((x + m - 1) // m) * m


def _adv_kernel(x_ref, w1_ref, b1_ref, w2_ref, b2_ref, w3_ref, b3_ref, y_ref):
    # GRL is the identity in the forward pass (gradient reversal is backward-only).
    x = x_ref[...]  # bf16

    # Linear(in_feature, 1024) + ReLU   (MXU bf16, f32 accumulate)
    h1 = jnp.dot(x, w1_ref[...], preferred_element_type=jnp.float32) + b1_ref[...]
    h1 = jnp.maximum(h1, 0.0)
    # Dropout(0.5): identity in eval mode.
    # TODO(synk): training-mode dropout would need pltpu.prng_seed/prng_random_bits.

    # Linear(1024, 1024) + ReLU
    h2 = jnp.dot(h1.astype(jnp.bfloat16), w2_ref[...],
                 preferred_element_type=jnp.float32) + b2_ref[...]
    h2 = jnp.maximum(h2, 0.0)

    # Linear(1024, 1) as a VPU multiply + XLU lane reduction against the single
    # real W3 column (avoids a 1024x128 MXU matmul that is 127/128 dead work).
    z = jnp.sum(h2 * w3_ref[...], axis=-1, keepdims=True) + b3_ref[...]
    # Clamp so exp never overflows to inf before the approx reciprocal.
    z = jnp.clip(z, -30.0, 30.0)
    sig = pl.reciprocal(1.0 + jnp.exp(-z), approx=True)

    # Broadcast into the lane-dense 128-wide slab (unmasked vst); column 0 is real.
    y_ref[...] = jnp.broadcast_to(sig, y_ref.shape).astype(y_ref.dtype)


def adversarial_forward(x, params, *, block_b=None):
    """x: (B, in_feature), ideally bf16.  params: see init_params (pre-transposed)."""
    B, d_in = x.shape
    H = params["w1"].shape[1]

    # Callers should hand us bf16 activations; only cast if they did not.
    if x.dtype != jnp.bfloat16:
        x = x.astype(jnp.bfloat16)

    if block_b is None:
        if B <= 8:
            block_b = B  # single tiny step (must equal full dim when B < 8)
        else:
            # Aim for >= 2 grid steps (v7x megacore) while capping at 512 rows.
            block_b = min(512, _round_up(pl.cdiv(B, 2), 8))
    grid = (pl.cdiv(B, block_b),)

    # Constant index_map + single buffering: weights stay VMEM-resident, fetched once.
    def resident(shape):
        return pl.BlockSpec(shape, lambda i: (0, 0), pipeline_mode=pl.Buffered(1))

    in_specs = [
        pl.BlockSpec((block_b, d_in), lambda i: (i, 0)),   # x: blocked on batch
        resident((d_in, H)), resident((1, H)),             # W1 (bf16), b1 (f32)
        resident((H, H)), resident((1, H)),                # W2 (bf16), b2 (f32)
        resident((1, H)), resident((1, 1)),                # w3 row (f32), b3 (f32)
    ]
    out_specs = pl.BlockSpec((block_b, OUT_PAD), lambda i: (i, 0))

    param_bytes = sum(int(p.size) * p.dtype.itemsize for p in params.values())
    # Single-buffered weights + double-buffered x/out blocks + f32 activation temps.
    block_bytes = 2 * block_b * (d_in * 2 + OUT_PAD * 2)
    act_bytes = 3 * block_b * H * 4
    vmem_limit = min(param_bytes + block_bytes + act_bytes + (16 << 20), 60 << 20)

    cost = pl.CostEstimate(
        flops=2 * B * (d_in * H + H * H + H),
        transcendentals=B,
        bytes_accessed=B * d_in * 2 + param_bytes + B * OUT_PAD * 2,
    )

    y_pad = pl.pallas_call(
        _adv_kernel,
        out_shape=jax.ShapeDtypeStruct((B, OUT_PAD), jnp.bfloat16),
        grid=grid,
        in_specs=in_specs,
        out_specs=out_specs,
        compiler_params=pltpu.CompilerParams(
            dimension_semantics=("parallel",),
            vmem_limit_bytes=int(vmem_limit),
        ),
        cost_estimate=cost,
    )(
        x,
        params["w1"], params["b1"],
        params["w2"], params["b2"],
        params["w3"], params["b3"],
    )
    # Column 0 of the lane-dense slab is the real width-1 sigmoid output.
    return y_pad[:, :1]


def init_params(key, in_feature, hidden=HIDDEN):
    """Synthetic params matching the PyTorch module's shapes.
    W1/W2 pre-transposed to (in, out) and stored bf16 for the MXU; biases f32.
    W3 is stored as a (1, hidden) f32 row for the VPU head, b3 as (1, 1) f32."""
    ks = jax.random.split(key, 6)

    def lin(kw, kb, fan_in, fan_out):
        bound = (1.0 / fan_in) ** 0.5            # PyTorch nn.Linear default init
        w = jax.random.uniform(kw, (fan_in, fan_out), jnp.float32, -bound, bound)
        b = jax.random.uniform(kb, (1, fan_out), jnp.float32, -bound, bound)
        return w, b

    w1, b1 = lin(ks[0], ks[1], in_feature, hidden)
    w2, b2 = lin(ks[2], ks[3], hidden, hidden)
    w3, b3 = lin(ks[4], ks[5], hidden, 1)

    return dict(
        w1=w1.astype(jnp.bfloat16), b1=b1,
        w2=w2.astype(jnp.bfloat16), b2=b2,
        w3=w3.T,          # (1, hidden) f32 row
        b3=b3,            # (1, 1) f32
    )


if __name__ == "__main__":
    key = jax.random.PRNGKey(0)
    kx, kp = jax.random.split(key)

    B, in_feature = 8, 32
    x = jax.random.normal(kx, (B, in_feature), jnp.float32).astype(jnp.bfloat16)
    params = init_params(kp, in_feature)

    y = jax.jit(adversarial_forward)(x, params)
    y = jax.block_until_ready(y)

    # Plain-JAX reference (f32 math with the same bf16-stored weights / bf16 x).
    xf = x.astype(jnp.float32)
    w1 = params["w1"].astype(jnp.float32)
    w2 = params["w2"].astype(jnp.float32)
    w3 = params["w3"].astype(jnp.float32).T          # (hidden, 1)
    h1 = jnp.maximum(xf @ w1 + params["b1"], 0.0)
    h2 = jnp.maximum(h1 @ w2 + params["b2"], 0.0)
    y_ref = jax.nn.sigmoid(h2 @ w3 + params["b3"])

    assert y.shape == (B, 1)
    # Loose tolerance: bf16 MXU inputs, bf16 output slab, approx EUP reciprocal.
    assert jnp.allclose(y.astype(jnp.float32), y_ref, atol=2e-2, rtol=2e-2), (y, y_ref)
    assert bool(jnp.all((y >= 0.0) & (y <= 1.0)))

    print("KERNEL_OK")
</pallas_src>

<mosaic_0001>
module attributes {stable_mosaic.version = 11 : i64} {
  func.func @_adv_kernel(%arg0: i32, %arg1: memref<8x32xbf16, #tpu.memory_space<vmem>>, %arg2: memref<32x1024xbf16, #tpu.memory_space<vmem>>, %arg3: memref<1x1024xf32, #tpu.memory_space<vmem>>, %arg4: memref<1024x1024xbf16, #tpu.memory_space<vmem>>, %arg5: memref<1x1024xf32, #tpu.memory_space<vmem>>, %arg6: memref<1x1024xf32, #tpu.memory_space<vmem>>, %arg7: memref<1x1xf32, #tpu.memory_space<vmem>>, %arg8: memref<8x128xbf16, #tpu.memory_space<vmem>>) attributes {dimension_semantics = [#tpu.dimension_semantics<parallel>], iteration_bounds = array<i64: 1>, scalar_prefetch = 0 : i64, scratch_operands = 0 : i64, tpu.core_type = #tpu.core_type<tc>, window_params = [{transform_indices = @transform_0, window_bounds = array<i64: 8, 32>}, {pipeline_mode = #tpu.pipeline_mode<synchronous>, transform_indices = @transform_1, window_bounds = array<i64: 32, 1024>}, {pipeline_mode = #tpu.pipeline_mode<synchronous>, transform_indices = @transform_2, window_bounds = array<i64: 1, 1024>}, {pipeline_mode = #tpu.pipeline_mode<synchronous>, transform_indices = @transform_3, window_bounds = array<i64: 1024, 1024>}, {pipeline_mode = #tpu.pipeline_mode<synchronous>, transform_indices = @transform_4, window_bounds = array<i64: 1, 1024>}, {pipeline_mode = #tpu.pipeline_mode<synchronous>, transform_indices = @transform_5, window_bounds = array<i64: 1, 1024>}, {pipeline_mode = #tpu.pipeline_mode<synchronous>, transform_indices = @transform_6, window_bounds = array<i64: 1, 1>}, {transform_indices = @transform_7, window_bounds = array<i64: 8, 128>}]} {
    %c0 = arith.constant 0 : index
    %c0_0 = arith.constant 0 : index
    %0 = vector.load %arg1[%c0, %c0_0] : memref<8x32xbf16, #tpu.memory_space<vmem>>, vector<8x32xbf16>
    %c0_1 = arith.constant 0 : index
    %c0_2 = arith.constant 0 : index
    %1 = vector.load %arg2[%c0_1, %c0_2] : memref<32x1024xbf16, #tpu.memory_space<vmem>>, vector<32x1024xbf16>
    %cst = arith.constant dense<0.000000e+00> : vector<8x1024xf32>
    %2 = tpu.matmul %0, %1, %cst {dimension_numbers = #tpu.dot_dimension_numbers<[1], [0], [0], [1], [0, 0, 1, 1], [], []>} : vector<8x32xbf16>, vector<32x1024xbf16>, vector<8x1024xf32> -> vector<8x1024xf32>
    %c0_3 = arith.constant 0 : index
    %c0_4 = arith.constant 0 : index
    %3 = vector.load %arg3[%c0_3, %c0_4] : memref<1x1024xf32, #tpu.memory_space<vmem>>, vector<1x1024xf32>
    %4 = vector.broadcast %3 : vector<1x1024xf32> to vector<8x1024xf32>
    %5 = arith.addf %2, %4 : vector<8x1024xf32>
    %cst_5 = arith.constant 0.000000e+00 : f32
    %6 = vector.broadcast %cst_5 : f32 to vector<8x1024xf32>
    %7 = arith.maximumf %5, %6 : vector<8x1024xf32>
    %8 = arith.truncf %7 : vector<8x1024xf32> to vector<8x1024xbf16>
    %c0_6 = arith.constant 0 : index
    %c0_7 = arith.constant 0 : index
    %9 = vector.load %arg4[%c0_6, %c0_7] : memref<1024x1024xbf16, #tpu.memory_space<vmem>>, vector<1024x1024xbf16>
    %cst_8 = arith.constant dense<0.000000e+00> : vector<8x1024xf32>
    %10 = tpu.matmul %8, %9, %cst_8 {dimension_numbers = #tpu.dot_dimension_numbers<[1], [0], [0], [1], [0, 0, 1, 1], [], []>} : vector<8x1024xbf16>, vector<1024x1024xbf16>, vector<8x1024xf32> -> vector<8x1024xf32>
    %c0_9 = arith.constant 0 : index
    %c0_10 = arith.constant 0 : index
    %11 = vector.load %arg5[%c0_9, %c0_10] : memref<1x1024xf32, #tpu.memory_space<vmem>>, vector<1x1024xf32>
    %12 = vector.broadcast %11 : vector<1x1024xf32> to vector<8x1024xf32>
    %13 = arith.addf %10, %12 : vector<8x1024xf32>
    %cst_11 = arith.constant 0.000000e+00 : f32
    %14 = vector.broadcast %cst_11 : f32 to vector<8x1024xf32>
    %15 = arith.maximumf %13, %14 : vector<8x1024xf32>
    %c0_12 = arith.constant 0 : index
    %c0_13 = arith.constant 0 : index
    %16 = vector.load %arg6[%c0_12, %c0_13] : memref<1x1024xf32, #tpu.memory_space<vmem>>, vector<1x1024xf32>
    %17 = vector.broadcast %16 : vector<1x1024xf32> to vector<8x1024xf32>
    %18 = arith.mulf %15, %17 : vector<8x1024xf32>
    %cst_14 = arith.constant dense<0.000000e+00> : vector<8xf32>
    %19 = vector.multi_reduction <add>, %18, %cst_14 [1] : vector<8x1024xf32> to vector<8xf32>
    %20 = vector.shape_cast %19 : vector<8xf32> to vector<8x1xf32>
    %c0_15 = arith.constant 0 : index
    %c0_16 = arith.constant 0 : index
    %21 = vector.load %arg7[%c0_15, %c0_16] : memref<1x1xf32, #tpu.memory_space<vmem>>, vector<1x1xf32>
    %22 = vector.broadcast %21 : vector<1x1xf32> to vector<8x1xf32>
    %23 = arith.addf %20, %22 : vector<8x1xf32>
    %cst_17 = arith.constant -3.000000e+01 : f32
    %cst_18 = arith.constant 3.000000e+01 : f32
    %24 = vector.broadcast %cst_17 : f32 to vector<8x1xf32>
    %25 = arith.maximumf %24, %23 : vector<8x1xf32>
    %26 = vector.broadcast %cst_18 : f32 to vector<8x1xf32>
    %27 = arith.minimumf %26, %25 : vector<8x1xf32>
    %cst_19 = arith.constant 0.000000e+00 : f32
    %28 = vector.broadcast %cst_19 : f32 to vector<8x1xf32>
    %29 = arith.subf %28, %27 : vector<8x1xf32>
    %30 = math.exp %29 : vector<8x1xf32>
    %cst_20 = arith.constant 1.000000e+00 : f32
    %31 = vector.broadcast %cst_20 : f32 to vector<8x1xf32>
    %32 = arith.addf %31, %30 : vector<8x1xf32>
    %33 = tpu.reciprocal %32 {approx = true} : vector<8x1xf32> -> vector<8x1xf32>
    %34 = vector.shape_cast %33 : vector<8x1xf32> to vector<8x1xf32>
    %35 = vector.broadcast %34 : vector<8x1xf32> to vector<8x128xf32>
    %36 = arith.truncf %35 : vector<8x128xf32> to vector<8x128xbf16>
    %c0_21 = arith.constant 0 : index
    %c0_22 = arith.constant 0 : index
    %37 = vector.load %arg8[%c0_21, %c0_22] : memref<8x128xbf16, #tpu.memory_space<vmem>>, vector<8x128xbf16>
    tpu.vector_store %arg8[%c0_21, %c0_22], %36 {strides = array<i32>} : memref<8x128xbf16, #tpu.memory_space<vmem>>, vector<8x128xbf16>,
    return
  }
  func.func @transform_0(%arg0: i32) -> (i32, i32) {
    %c0_i32 = arith.constant 0 : i32
    %c0_i32_0 = arith.constant 0 : i32
    return %arg0, %c0_i32 : i32, i32
  }
  func.func @transform_1(%arg0: i32) -> (i32, i32) {
    %c0_i32 = arith.constant 0 : i32
    %c0_i32_0 = arith.constant 0 : i32
    %c0_i32_1 = arith.constant 0 : i32
    return %c0_i32, %c0_i32_0 : i32, i32
  }
  func.func @transform_2(%arg0: i32) -> (i32, i32) {
    %c0_i32 = arith.constant 0 : i32
    %c0_i32_0 = arith.constant 0 : i32
    %c0_i32_1 = arith.constant 0 : i32
    return %c0_i32, %c0_i32_0 : i32, i32
  }
  func.func @transform_3(%arg0: i32) -> (i32, i32) {
    %c0_i32 = arith.constant 0 : i32
    %c0_i32_0 = arith.constant 0 : i32
    %c0_i32_1 = arith.constant 0 : i32
    return %c0_i32, %c0_i32_0 : i32, i32
  }
  func.func @transform_4(%arg0: i32) -> (i32, i32) {
    %c0_i32 = arith.constant 0 : i32
    %c0_i32_0 = arith.constant 0 : i32
    %c0_i32_1 = arith.constant 0 : i32
    return %c0_i32, %c0_i32_0 : i32, i32
  }
  func.func @transform_5(%arg0: i32) -> (i32, i32) {
    %c0_i32 = arith.constant 0 : i32
    %c0_i32_0 = arith.constant 0 : i32
    %c0_i32_1 = arith.constant 0 : i32
    return %c0_i32, %c0_i32_0 : i32, i32
  }
  func.func @transform_6(%arg0: i32) -> (i32, i32) {
    %c0_i32 = arith.constant 0 : i32
    %c0_i32_0 = arith.constant 0 : i32
    %c0_i32_1 = arith.constant 0 : i32
    return %c0_i32, %c0_i32_0 : i32, i32
  }
  func.func @transform_7(%arg0: i32) -> (i32, i32) {
    %c0_i32 = arith.constant 0 : i32
    %c0_i32_0 = arith.constant 0 : i32
    return %arg0, %c0_i32 : i32, i32
  }
}

</mosaic_0001>

<bundles_post_ra>
// kernel: adversarial_forward.1
= control target key start
LH: loop header
LB: loop body
LE: loop exit
PB: predicated region body
PF: predicated region fallthrough
CT: control target
= control target key end

     0   :  { %s5314_s0 = inlined_call_operand.hbm [shape: bf16[8,32], index: 0, kind: input, shape index: {}]   ;;  %s5315_s1 = inlined_call_operand.hbm [shape: bf16[32,1024], index: 1, kind: input, shape index: {}]   ;;  %s5316_s2 = inlined_call_operand.hbm [shape: f32[1,1024], index: 2, kind: input, shape index: {}]   ;;  %s5317_s3 = inlined_call_operand.hbm [shape: bf16[1024,1024], index: 3, kind: input, shape index: {}]   ;;  %s5318_s4 = inlined_call_operand.hbm [shape: f32[1,1024], index: 4, kind: input, shape index: {}]   ;;  %s5319_s5 = inlined_call_operand.hbm [shape: f32[1,1024], index: 5, kind: input, shape index: {}]   ;;  %s5320_s6 = inlined_call_operand.<no memory space> [shape: f32[1,1], index: 6, kind: input, shape index: {}]   ;;  %s5321_s7 = inlined_call_operand.vmem [shape: bf16[8,128], index: 7, kind: output, shape index: {}]  }
   0x1   :  { %v12_v0 = vstv %s5320_s6 }
   0x2   :  { %13 = vst [vmem:[#allocation2] sm:$0x1] %v12_v0 }
   0x3   :  { %14 = vsyncpa [#allocation4], 0 }
   0x4   :  { %15 = vsyncpa [#allocation6], 0 }
   0x5   :  { %16 = vsyncpa [#allocation9], 0 }
   0x6   :  { %17 = vsyncpa [#allocation12], 0  ;;  %s5038_s26 = smov [#allocation5]   ;;  %s4898_s30 = scalar_lea.hbm %s5315_s1, 2048 }
   0x7   :  { %s33_s27 = sshll.u32 %s5038_s26, 4  ;;  %p4899_p0 = scmp.ne.s32.totalorder %s5315_s1, %s4898_s30  ;;  %s34_s27 = int_to_ptr.vmem [resolvable:$true] %s33_s27 }
   0x8   :  { %p4902_p1 = scmp.lt.u32.totalorder %s4898_s30, %s5315_s1 }
   0xa   :  { %p4904_p2 = pnand %p4902_p1, %p4899_p0 }
   0xc   :  { %4907 = shalt.err (!%p4904_p2)
}
   0xd   :  { %s4908_s6 = scalar_lea.vmem %s34_s27, 2048  ;;  %p4913_p4 = scmp.lt.s32.totalorder %s34_s27, %s34_s27 }
   0xe   :  { %p4909_p3 = scmp.ne.s32.totalorder %s34_s27, %s4908_s6  ;;  %p4914_p5 = scmp.lt.s32.totalorder %s4908_s6, %s4908_s6 }
  0x10   :  { %p4915_p6 = por %p4914_p5, %p4913_p4 }
  0x12   :  { %p4916_p7 = pnand %p4915_p6, %p4909_p3 }
  0x14   :  { %4919 = shalt.err (!%p4916_p7)
}
  0x15   :  { %s5039_s12 = smov 512   ;;  %s5040_s13 = smov 32  }
  0x16   :  { %39 = dma.hbm_to_vmem [thread:$0]  %s5315_s1, 2048, %s34_s27, [#allocation6], %s5039_s12, %s5039_s12, %s5040_s13  }
  0x17   :  { %s5041_s16 = smov [#allocation8]   ;;  %s5042_s18 = smov [#allocation3]  }
  0x18   :  { %s55_s17 = sshll.u32 %s5041_s16, 4  ;;  %s24_s19 = sshll.u32 %s5042_s18, 4  ;;  %s56_s17 = int_to_ptr.vmem [resolvable:$true] %s55_s17  ;;  %s25_s19 = int_to_ptr.vmem [resolvable:$true] %s24_s19 }
  0x19   :  { %s4920_s22 = scalar_lea.hbm %s5317_s3, 65536 }
  0x1a   :  { %p4921_p8 = scmp.ne.s32.totalorder %s5317_s3, %s4920_s22  ;;  %p4924_p9 = scmp.lt.u32.totalorder %s4920_s22, %s5317_s3 }
  0x1c   :  { %p4926_p10 = pnand %p4924_p9, %p4921_p8 }
  0x1e   :  { %4929 = shalt.err (!%p4926_p10)
}
  0x1f   :  { %s4930_s1 = scalar_lea.vmem %s56_s17, 65536  ;;  %p4935_p12 = scmp.lt.s32.totalorder %s56_s17, %s56_s17 }
  0x20   :  { %p4931_p11 = scmp.ne.s32.totalorder %s56_s17, %s4930_s1  ;;  %p4936_p13 = scmp.lt.s32.totalorder %s4930_s1, %s4930_s1 }
  0x22   :  { %p4937_p0 = por %p4936_p13, %p4935_p12 }
  0x24   :  { %p4938_p1 = pnand %p4937_p0, %p4931_p11 }
  0x26   :  { %4941 = shalt.err (!%p4938_p1)
}
  0x27   :  { %61 = dma.hbm_to_vmem [thread:$0]  %s5317_s3, 65536, %s56_s17, [#allocation9], %s5039_s12, %s5039_s12, %s5040_s13  }
  0x28   :  { %s4942_s8 = scalar_lea.hbm %s5314_s0, 64 }
  0x29   :  { %p4943_p2 = scmp.ne.s32.totalorder %s5314_s0, %s4942_s8  ;;  %p4946_p3 = scmp.lt.u32.totalorder %s4942_s8, %s5314_s0 }
  0x2b   :  { %p4948_p4 = pnand %p4946_p3, %p4943_p2 }
  0x2d   :  { %4951 = shalt.err (!%p4948_p4)
}
  0x2e   :  { %s4952_s14 = scalar_lea.vmem %s25_s19, 64  ;;  %p4957_p6 = scmp.lt.s32.totalorder %s25_s19, %s25_s19 }
  0x2f   :  { %p4953_p5 = scmp.ne.s32.totalorder %s25_s19, %s4952_s14  ;;  %p4958_p7 = scmp.lt.s32.totalorder %s4952_s14, %s4952_s14 }
  0x31   :  { %p4959_p8 = por %p4958_p7, %p4957_p6 }
  0x33   :  { %p4960_p9 = pnand %p4959_p8, %p4953_p5 }
  0x35   :  { %4963 = shalt.err (!%p4960_p9)
}
  0x36   :  { %27 = dma.hbm_to_vmem [thread:$0]  %s5314_s0, 64, %s25_s19, [#allocation4]  }
  0x37   :  { %s5043_s13 = smov [#allocation7]   ;;  %s5044_s16 = smov [#allocation10]  }
  0x38   :  { %s46_s15 = sshll.u32 %s5043_s13, 4  ;;  %s68_s17 = sshll.u32 %s5044_s16, 4  ;;  %s47_s15 = int_to_ptr.vmem [resolvable:$true] %s46_s15  ;;  %s69_s17 = int_to_ptr.vmem [resolvable:$true] %s68_s17 }
  0x39   :  { %s4964_s21 = scalar_lea.hbm %s5316_s2, 128 }
  0x3a   :  { %p4965_p10 = scmp.ne.s32.totalorder %s5316_s2, %s4964_s21  ;;  %p4968_p11 = scmp.lt.u32.totalorder %s4964_s21, %s5316_s2 }
  0x3c   :  { %p4970_p12 = pnand %p4968_p11, %p4965_p10 }
  0x3e   :  { %4973 = shalt.err (!%p4970_p12)
}
  0x3f   :  { %s4974_s0 = scalar_lea.vmem %s47_s15, 128  ;;  %p4979_p0 = scmp.lt.s32.totalorder %s47_s15, %s47_s15 }
  0x40   :  { %p4975_p13 = scmp.ne.s32.totalorder %s47_s15, %s4974_s0  ;;  %p4980_p1 = scmp.lt.s32.totalorder %s4974_s0, %s4974_s0 }
  0x42   :  { %p4981_p2 = por %p4980_p1, %p4979_p0 }
  0x44   :  { %p4982_p3 = pnand %p4981_p2, %p4975_p13 }
  0x46   :  { %4985 = shalt.err (!%p4982_p3)
}
  0x47   :  { %49 = dma.hbm_to_vmem [thread:$0]  %s5316_s2, 128, %s47_s15, [#allocation6]  }
  0x48   :  { %s4986_s28 = scalar_lea.hbm %s5318_s4, 128 }
  0x49   :  { %p4987_p4 = scmp.ne.s32.totalorder %s5318_s4, %s4986_s28  ;;  %p4990_p5 = scmp.lt.u32.totalorder %s4986_s28, %s5318_s4 }
  0x4b   :  { %p4992_p6 = pnand %p4990_p5, %p4987_p4 }
  0x4d   :  { %4995 = shalt.err (!%p4992_p6)
}
  0x4e   :  { %s4996_s10 = scalar_lea.vmem %s69_s17, 128  ;;  %p5001_p8 = scmp.lt.s32.totalorder %s69_s17, %s69_s17 }
  0x4f   :  { %p4997_p7 = scmp.ne.s32.totalorder %s69_s17, %s4996_s10  ;;  %p5002_p9 = scmp.lt.s32.totalorder %s4996_s10, %s4996_s10 }
  0x51   :  { %p5003_p10 = por %p5002_p9, %p5001_p8 }
  0x53   :  { %p5004_p11 = pnand %p5003_p10, %p4997_p7 }
  0x55   :  { %5007 = shalt.err (!%p5004_p11)
}
  0x56   :  { %71 = dma.hbm_to_vmem [thread:$0]  %s5318_s4, 128, %s69_s17, [#allocation9]  }
  0x57   :  { %s5045_s6 = smov [#allocation11]   ;;  %s5008_s13 = scalar_lea.hbm %s5319_s5, 128 }
  0x58   :  { %s78_s14 = sshll.u32 %s5045_s6, 4  ;;  %p5009_p12 = scmp.ne.s32.totalorder %s5319_s5, %s5008_s13  ;;  %s79_s14 = int_to_ptr.vmem [resolvable:$true] %s78_s14 }
  0x59   :  { %p5012_p13 = scmp.lt.u32.totalorder %s5008_s13, %s5319_s5 }
  0x5b   :  { %p5014_p0 = pnand %p5012_p13, %p5009_p12 }
  0x5d   :  { %5017 = shalt.err (!%p5014_p0)
}
  0x5e   :  { %s5018_s21 = scalar_lea.vmem %s79_s14, 128  ;;  %p5023_p2 = scmp.lt.s32.totalorder %s79_s14, %s79_s14 }
  0x5f   :  { %p5019_p1 = scmp.ne.s32.totalorder %s79_s14, %s5018_s21  ;;  %p5024_p3 = scmp.lt.s32.totalorder %s5018_s21, %s5018_s21 }
  0x61   :  { %p5025_p4 = por %p5024_p3, %p5023_p2 }
  0x63   :  { %p5026_p5 = pnand %p5025_p4, %p5019_p1 }
  0x65   :  { %5029 = shalt.err (!%p5026_p5)
}
  0x66   :  { %81 = dma.hbm_to_vmem [thread:$0]  %s5319_s5, 128, %s79_s14, [#allocation12]  }
  0x67   :  { %5030 = dma.done.wait [#allocation4], 64  }
  0x68   :  { %5031 = vsyncadd [#allocation4], 4294967232 }
  0x69   :  { %5032 = dma.done.wait [#allocation6], 2176  }
  0x6a   :  { %5033 = vsyncadd [#allocation6], 4294965120 }
  0x6b   :  { %5034 = dma.done.wait [#allocation9], 65664  }
  0x6c   :  { %5035 = vsyncadd [#allocation9], 4294901632 }
  0x6d   :  { %5036 = dma.done.wait [#allocation12], 128  }
  0x6e   :  { %5037 = vsyncadd [#allocation12], 4294967168  ;;  %v5046_v1 = vmov 0   ;;  %v104_v2 = vld [vmem:[#allocation5] sm:$0xff]  ;;  %v105_v8 = vld [vmem:[#allocation5 + $0x8] sm:$0xff]  ;;  %vm242_vm0 = vcmask 261120  }
  0x6f   :  { %278 = vmatprep.mubr.bf16.mxu0 %v5046_v1  ;;  %319 = vmatprep.mubr.bf16.mxu1 %v5046_v1  ;;  %v108_v3 = vld [vmem:[#allocation5 + $0x20] sm:$0xff]  ;;  %v109_v10 = vld [vmem:[#allocation5 + $0x28] sm:$0xff]  ;;  %v106_v16 = vld [vmem:[#allocation5 + $0x10] sm:$0xff] }
  0x70   :  { %4892 = vset.pattern.permute.xlu0 %v5046_v1  ;;  %v112_v4 = vld [vmem:[#allocation5 + $0x40] sm:$0xff]  ;;  %v4294_v5 = vcombine.high %v104_v2, %v108_v3  ;;  %v4293_v6 = vcombine.low %v104_v2, %v108_v3  ;;  %v113_v11 = vld [vmem:[#allocation5 + $0x48] sm:$0xff]  ;;  %v4296_v13 = vcombine.high %v105_v8, %v109_v10  ;;  %v4295_v14 = vcombine.low %v105_v8, %v109_v10  ;;  %v110_v17 = vld [vmem:[#allocation5 + $0x30] sm:$0xff] }
  0x71   :  { %v116_v7 = vld [vmem:[#allocation5 + $0x60] sm:$0xff]  ;;  %v117_v12 = vld [vmem:[#allocation5 + $0x68] sm:$0xff]  ;;  %v107_v19 = vld [vmem:[#allocation5 + $0x18] sm:$0xff]  ;;  %v4298_v21 = vcombine.high %v106_v16, %v110_v17  ;;  %v4297_v27 = vcombine.low %v106_v16, %v110_v17 }
  0x72   :  { %v4302_v9 = vcombine.high %v112_v4, %v116_v7  ;;  %246 = vmatprep.subr.bf16.mxu0 %v4294_v5  ;;  %v4304_v15 = vcombine.high %v113_v11, %v117_v12  ;;  %v4301_v18 = vcombine.low %v112_v4, %v116_v7  ;;  %v111_v20 = vld [vmem:[#allocation5 + $0x38] sm:$0xff]  ;;  %287 = vmatprep.subr.bf16.mxu1 %v4296_v13  ;;  %v114_v23 = vld [vmem:[#allocation5 + $0x50] sm:$0xff]  ;;  %v426_v32 = vld [vmem:[#allocation8] sm:$0xff] }
  0x73   :  { %247 = vmatpush1.bf16.msra.mxu0 %v4293_v6  ;;  %288 = vmatpush1.bf16.msra.mxu1 %v4295_v14  ;;  %v4303_v22 = vcombine.low %v113_v11, %v117_v12  ;;  %v118_v24 = vld [vmem:[#allocation5 + $0x70] sm:$0xff]  ;;  %v4300_v25 = vcombine.high %v107_v19, %v111_v20  ;;  %v103_v26 = vld [vmem:[#allocation3] sm:$0xf]  ;;  %v4299_v31 = vcombine.low %v107_v19, %v111_v20  ;;  %v430_v33 = vld [vmem:[#allocation8 + $0x20] sm:$0xff] }
  0x74   :  { %248 = vmatprep.subr.bf16.mxu0 %v4302_v9  ;;  %289 = vmatprep.subr.bf16.mxu1 %v4304_v15  ;;  %v115_v28 = vld [vmem:[#allocation5 + $0x58] sm:$0xff]  ;;  %v4306_v30 = vcombine.high %v114_v23, %v118_v24  ;;  %v4305_v35 = vcombine.low %v114_v23, %v118_v24  ;;  %v427_v36 = vld [vmem:[#allocation8 + $0x8] sm:$0xff]  ;;  %v4314_v38 = vcombine.high %v426_v32, %v430_v33  ;;  %v434_v40 = vld [vmem:[#allocation8 + $0x40] sm:$0xff] }
  0x75   :  { %v119_v29 = vld [vmem:[#allocation5 + $0x78] sm:$0xff]  ;;  %v431_v37 = vld [vmem:[#allocation8 + $0x28] sm:$0xff]  ;;  %v438_v41 = vld [vmem:[#allocation8 + $0x60] sm:$0xff]  ;;  %v4313_v43 = vcombine.low %v426_v32, %v430_v33 }
  0x76   :  { %v4308_v34 = vcombine.high %v115_v28, %v119_v29  ;;  %v4307_v39 = vcombine.low %v115_v28, %v119_v29  ;;  %v4316_v42 = vcombine.high %v427_v36, %v431_v37  ;;  %v435_v44 = vld [vmem:[#allocation8 + $0x48] sm:$0xff]  ;;  %v4322_v46 = vcombine.high %v434_v40, %v438_v41  ;;  %v442_v48 = vld [vmem:[#allocation8 + $0x80] sm:$0xff] }
  0x77   :  { %249 = vmatpush1.bf16.msra.mxu0 %v4301_v18  ;;  %290 = vmatpush1.bf16.msra.mxu1 %v4303_v22  ;;  %v439_v45 = vld [vmem:[#allocation8 + $0x68] sm:$0xff]  ;;  %v4315_v47 = vcombine.low %v427_v36, %v431_v37  ;;  %v446_v49 = vld [vmem:[#allocation8 + $0xa0] sm:$0xff]  ;;  %v4321_v51 = vcombine.low %v434_v40, %v438_v41 }
  0x78   :  { %328 = vmatprep.subr.bf16.mxu0 %v4298_v21  ;;  %369 = vmatprep.subr.bf16.mxu1 %v4300_v25  ;;  %v4324_v50 = vcombine.high %v435_v44, %v439_v45  ;;  %v443_v52 = vld [vmem:[#allocation8 + $0x88] sm:$0xff]  ;;  %v4330_v54 = vcombine.high %v442_v48, %v446_v49  ;;  %v4323_v55 = vcombine.low %v435_v44, %v439_v45  ;;  %v450_v56 = vld [vmem:[#allocation8 + $0xc0] sm:$0xff] }
  0x79   :  { %v447_v53 = vld [vmem:[#allocation8 + $0xa8] sm:$0xff]  ;;  %v454_v57 = vld [vmem:[#allocation8 + $0xe0] sm:$0xff]  ;;  %v4329_v59 = vcombine.low %v442_v48, %v446_v49 }
  0x7a   :  { %4309 = vmatmul.mubr.msk.bf16.vlgmr.msra.gmra.mrb[0].mxu0 %vm242_vm0, %v103_v26  ;;  %4310 = vmatmul.mubr.msk.bf16.vlgmr.msra.gmra.mrb[0].mxu1 %vm242_vm0, %v103_v26  ;;  %v4332_v58 = vcombine.high %v443_v52, %v447_v53  ;;  %v451_v60 = vld [vmem:[#allocation8 + $0xc8] sm:$0xff]  ;;  %v4338_v62 = vcombine.high %v450_v56, %v454_v57  ;;  %v4331_v63 = vcombine.low %v443_v52, %v447_v53  ;;  %v458_v0 = vld [vmem:[#allocation8 + $0x100] sm:$0xff] }
  0x7b   :  { %329 = vmatpush1.bf16.msra.mxu0 %v4297_v27  ;;  %360 = vmatprep.mubr.bf16.mxu0 %v5046_v1  ;;  %v455_v61 = vld [vmem:[#allocation8 + $0xe8] sm:$0xff]  ;;  %v4337_v3 = vcombine.low %v450_v56, %v454_v57  ;;  %v466_v8 = vld [vmem:[#allocation8 + $0x140] sm:$0xff] }
  0x7c   :  { %330 = vmatprep.subr.bf16.mxu0 %v4306_v30  ;;  %370 = vmatpush1.bf16.msra.mxu1 %v4299_v31  ;;  %v4340_v2 = vcombine.high %v451_v60, %v455_v61  ;;  %v459_v4 = vld [vmem:[#allocation8 + $0x108] sm:$0xff]  ;;  %v4339_v7 = vcombine.low %v451_v60, %v455_v61  ;;  %v470_v9 = vld [vmem:[#allocation8 + $0x160] sm:$0xff] }
  0x7d   :  { %401 = vmatprep.mubr.bf16.mxu1 %v5046_v1  ;;  %371 = vmatprep.subr.bf16.mxu1 %v4308_v34  ;;  %v462_v1 = vld [vmem:[#allocation8 + $0x120] sm:$0xff]  ;;  %v463_v5 = vld [vmem:[#allocation8 + $0x128] sm:$0xff]  ;;  %v4354_v14 = vcombine.high %v466_v8, %v470_v9  ;;  %v4353_v19 = vcombine.low %v466_v8, %v470_v9 }
  0x7e   :  { %v4346_v6 = vcombine.high %v458_v0, %v462_v1  ;;  %v4348_v10 = vcombine.high %v459_v4, %v463_v5  ;;  %v4345_v11 = vcombine.low %v458_v0, %v462_v1  ;;  %v467_v12 = vld [vmem:[#allocation8 + $0x148] sm:$0xff]  ;;  %v4347_v15 = vcombine.low %v459_v4, %v463_v5  ;;  %v474_v16 = vld [vmem:[#allocation8 + $0x180] sm:$0xff] }
  0x7f   :  { %331 = vmatpush1.bf16.msra.mxu0 %v4305_v35  ;;  %v471_v13 = vld [vmem:[#allocation8 + $0x168] sm:$0xff]  ;;  %v478_v17 = vld [vmem:[#allocation8 + $0x1a0] sm:$0xff] }
  0x80   :  { %3540 = vmatprep.subr.bf16.mxu0 %v4314_v38  ;;  %372 = vmatpush1.bf16.msra.mxu1 %v4307_v39  ;;  %v4356_v18 = vcombine.high %v467_v12, %v471_v13  ;;  %v475_v20 = vld [vmem:[#allocation8 + $0x188] sm:$0xff]  ;;  %v4362_v22 = vcombine.high %v474_v16, %v478_v17  ;;  %v4355_v23 = vcombine.low %v467_v12, %v471_v13  ;;  %v482_v24 = vld [vmem:[#allocation8 + $0x1c0] sm:$0xff] }
  0x81   :  { %3704 = vmatprep.subr.bf16.mxu1 %v4316_v42  ;;  %v479_v21 = vld [vmem:[#allocation8 + $0x1a8] sm:$0xff]  ;;  %v486_v25 = vld [vmem:[#allocation8 + $0x1e0] sm:$0xff]  ;;  %v4361_v27 = vcombine.low %v474_v16, %v478_v17 }
  0x82   :  { %4311 = vmatmul.mubr.msk.bf16.vlgmr.msra.gmra.mrb[4].mxu0 %vm242_vm0, %v103_v26  ;;  %v483_v28 = vld [vmem:[#allocation8 + $0x1c8] sm:$0xff]  ;;  %v4370_v30 = vcombine.high %v482_v24, %v486_v25  ;;  %v4363_v31 = vcombine.low %v475_v20, %v479_v21  ;;  %v490_v32 = vld [vmem:[#allocation8 + $0x200] sm:$0xff]  ;;  %v4369_v35 = vcombine.low %v482_v24, %v486_v25 }
  0x83   :  { %3541 = vmatpush1.bf16.msra.mxu0 %v4313_v43  ;;  %4312 = vmatmul.mubr.msk.bf16.vlgmr.msra.gmra.mrb[4].mxu1 %vm242_vm0, %v103_v26  ;;  %v4364_v26 = vcombine.high %v475_v20, %v479_v21  ;;  %v487_v29 = vld [vmem:[#allocation8 + $0x1e8] sm:$0xff]  ;;  %v494_v33 = vld [vmem:[#allocation8 + $0x220] sm:$0xff] }
  0x84   :  { %3542 = vmatprep.subr.bf16.mxu0 %v4322_v46  ;;  %3705 = vmatpush1.bf16.msra.mxu1 %v4315_v47  ;;  %v4372_v34 = vcombine.high %v483_v28, %v487_v29  ;;  %v491_v36 = vld [vmem:[#allocation8 + $0x208] sm:$0xff]  ;;  %v4378_v38 = vcombine.high %v490_v32, %v494_v33  ;;  %v4371_v39 = vcombine.low %v483_v28, %v487_v29  ;;  %v498_v40 = vld [vmem:[#allocation8 + $0x240] sm:$0xff] }
  0x85   :  { %3706 = vmatprep.subr.bf16.mxu1 %v4324_v50  ;;  %v495_v37 = vld [vmem:[#allocation8 + $0x228] sm:$0xff]  ;;  %v502_v41 = vld [vmem:[#allocation8 + $0x260] sm:$0xff]  ;;  %v4377_v43 = vcombine.low %v490_v32, %v494_v33 }
  0x86   :  { %v4380_v42 = vcombine.high %v491_v36, %v495_v37  ;;  %v499_v44 = vld [vmem:[#allocation8 + $0x248] sm:$0xff]  ;;  %v4386_v46 = vcombine.high %v498_v40, %v502_v41  ;;  %v4379_v47 = vcombine.low %v491_v36, %v495_v37  ;;  %v506_v48 = vld [vmem:[#allocation8 + $0x280] sm:$0xff] }
  0x87   :  { %3543 = vmatpush1.bf16.msra.mxu0 %v4321_v51  ;;  %v503_v45 = vld [vmem:[#allocation8 + $0x268] sm:$0xff]  ;;  %v510_v49 = vld [vmem:[#allocation8 + $0x2a0] sm:$0xff]  ;;  %v4385_v51 = vcombine.low %v498_v40, %v502_v41 }
  0x88   :  { %3544 = vmatprep.subr.bf16.mxu0 %v4330_v54  ;;  %3707 = vmatpush1.bf16.msra.mxu1 %v4323_v55  ;;  %v4388_v50 = vcombine.high %v499_v44, %v503_v45  ;;  %v507_v52 = vld [vmem:[#allocation8 + $0x288] sm:$0xff]  ;;  %v4394_v54 = vcombine.high %v506_v48, %v510_v49  ;;  %v4387_v55 = vcombine.low %v499_v44, %v503_v45  ;;  %v514_v56 = vld [vmem:[#allocation8 + $0x2c0] sm:$0xff] }
  0x89   :  { %3708 = vmatprep.subr.bf16.mxu1 %v4332_v58  ;;  %v511_v53 = vld [vmem:[#allocation8 + $0x2a8] sm:$0xff]  ;;  %v518_v57 = vld [vmem:[#allocation8 + $0x2e0] sm:$0xff] }
  0x8a   :  { %v4396_v58 = vcombine.high %v507_v52, %v511_v53  ;;  %v515_v60 = vld [vmem:[#allocation8 + $0x2c8] sm:$0xff]  ;;  %v522_v0 = vld [vmem:[#allocation8 + $0x300] sm:$0xff] }
  0x8b   :  { %3545 = vmatpush1.bf16.msra.mxu0 %v4329_v59  ;;  %v4393_v59 = vcombine.low %v506_v48, %v510_v49  ;;  %v519_v61 = vld [vmem:[#allocation8 + $0x2e8] sm:$0xff]  ;;  %v526_v1 = vld [vmem:[#allocation8 + $0x320] sm:$0xff] }
  0x8c   :  { %3546 = vmatprep.subr.bf16.mxu0 %v4338_v62  ;;  %3709 = vmatpush1.bf16.msra.mxu1 %v4331_v63  ;;  %v4402_v62 = vcombine.high %v514_v56, %v518_v57  ;;  %v4395_v63 = vcombine.low %v507_v52, %v511_v53  ;;  %v523_v4 = vld [vmem:[#allocation8 + $0x308] sm:$0xff]  ;;  %v530_v8 = vld [vmem:[#allocation8 + $0x340] sm:$0xff] }
  0x8d   :  { %3710 = vmatprep.subr.bf16.mxu1 %v4340_v2  ;;  %v4404_v2 = vcombine.high %v515_v60, %v519_v61  ;;  %v527_v5 = vld [vmem:[#allocation8 + $0x328] sm:$0xff]  ;;  %v534_v9 = vld [vmem:[#allocation8 + $0x360] sm:$0xff] }
  0x8e   :  { %v531_v12 = vld [vmem:[#allocation8 + $0x348] sm:$0xff]  ;;  %v4417_v17 = vcombine.low %v530_v8, %v534_v9  ;;  %v542_v20 = vld [vmem:[#allocation8 + $0x3a0] sm:$0xff] }
  0x8f   :  { %3547 = vmatpush1.bf16.msra.mxu0 %v4337_v3  ;;  %v4401_v3 = vcombine.low %v514_v56, %v518_v57  ;;  %v535_v13 = vld [vmem:[#allocation8 + $0x368] sm:$0xff]  ;;  %v550_v28 = vld [vmem:[#allocation8 + $0x3e0] sm:$0xff] }
  0x90   :  { %3548 = vmatprep.subr.bf16.mxu0 %v4346_v6  ;;  %3711 = vmatpush1.bf16.msra.mxu1 %v4339_v7  ;;  %v4410_v6 = vcombine.high %v522_v0, %v526_v1  ;;  %v4403_v7 = vcombine.low %v515_v60, %v519_v61  ;;  %v4420_v16 = vcombine.high %v531_v12, %v535_v13  ;;  %v539_v21 = vld [vmem:[#allocation8 + $0x388] sm:$0xff]  ;;  %v558_v36 = vld [vmem:[#allocation8 + $0x420] sm:$0xff] }
  0x91   :  { %3712 = vmatprep.subr.bf16.mxu1 %v4348_v10  ;;  %v4412_v10 = vcombine.high %v523_v4, %v527_v5  ;;  %v547_v29 = vld [vmem:[#allocation8 + $0x3c8] sm:$0xff]  ;;  %v562_v60 = vld [vmem:[#allocation8 + $0x440] sm:$0xff] }
  0x92   :  { %v555_v37 = vld [vmem:[#allocation8 + $0x408] sm:$0xff] }
  0x93   :  { %3549 = vmatpush1.bf16.msra.mxu0 %v4345_v11  ;;  %v4409_v11 = vcombine.low %v522_v0, %v526_v1  ;;  %v563_v0 = vld [vmem:[#allocation8 + $0x448] sm:$0xff] }
  0x94   :  { %3550 = vmatprep.subr.bf16.mxu0 %v4354_v14  ;;  %3713 = vmatpush1.bf16.msra.mxu1 %v4347_v15  ;;  %v4418_v14 = vcombine.high %v530_v8, %v534_v9  ;;  %v4411_v15 = vcombine.low %v523_v4, %v527_v5  ;;  %v567_v1 = vld [vmem:[#allocation8 + $0x468] sm:$0xff] }
  0x95   :  { %3714 = vmatprep.subr.bf16.mxu1 %v4356_v18  ;;  %v4419_v18 = vcombine.low %v531_v12, %v535_v13  ;;  %v4452_v9 = vcombine.high %v563_v0, %v567_v1  ;;  %v571_v12 = vld [vmem:[#allocation8 + $0x488] sm:$0xff] }
  0x96   :  { %v575_v13 = vld [vmem:[#allocation8 + $0x4a8] sm:$0xff] }
  0x97   :  { %3551 = vmatpush1.bf16.msra.mxu0 %v4353_v19  ;;  %v538_v19 = vld [vmem:[#allocation8 + $0x380] sm:$0xff] }
  0x98   :  { %3552 = vmatprep.subr.bf16.mxu0 %v4362_v22  ;;  %3715 = vmatpush1.bf16.msra.mxu1 %v4355_v23  ;;  %v4426_v22 = vcombine.high %v538_v19, %v542_v20  ;;  %v543_v23 = vld [vmem:[#allocation8 + $0x3a8] sm:$0xff]  ;;  %v4425_v24 = vcombine.low %v538_v19, %v542_v20 }
  0x99   :  { %3716 = vmatprep.subr.bf16.mxu1 %v4364_v26  ;;  %v4427_v25 = vcombine.low %v539_v21, %v543_v23  ;;  %v4428_v26 = vcombine.high %v539_v21, %v543_v23  ;;  %v4460_v21 = vcombine.high %v571_v12, %v575_v13 }
  0x9b   :  { %3553 = vmatpush1.bf16.msra.mxu0 %v4361_v27  ;;  %v546_v27 = vld [vmem:[#allocation8 + $0x3c0] sm:$0xff] }
  0x9c   :  { %3554 = vmatprep.subr.bf16.mxu0 %v4370_v30  ;;  %3717 = vmatpush1.bf16.msra.mxu1 %v4363_v31  ;;  %v4434_v30 = vcombine.high %v546_v27, %v550_v28  ;;  %v551_v31 = vld [vmem:[#allocation8 + $0x3e8] sm:$0xff]  ;;  %v4433_v32 = vcombine.low %v546_v27, %v550_v28  ;;  %v4459_v28 = vcombine.low %v571_v12, %v575_v13 }
  0x9d   :  { %3718 = vmatprep.subr.bf16.mxu1 %v4372_v34  ;;  %v4435_v33 = vcombine.low %v547_v29, %v551_v31  ;;  %v4436_v34 = vcombine.high %v547_v29, %v551_v31  ;;  %v586_v31 = vld [vmem:[#allocation8 + $0x500] sm:$0xff]  ;;  %v619_v12 = vld [vmem:[#allocation8 + $0x608] sm:$0xff] }
  0x9e   :  { %v623_v13 = vld [vmem:[#allocation8 + $0x628] sm:$0xff] }
  0x9f   :  { %3555 = vmatpush1.bf16.msra.mxu0 %v4369_v35  ;;  %v554_v35 = vld [vmem:[#allocation8 + $0x400] sm:$0xff] }
  0xa0   :  { %3556 = vmatprep.subr.bf16.mxu0 %v4378_v38  ;;  %3719 = vmatpush1.bf16.msra.mxu1 %v4371_v39  ;;  %v4442_v38 = vcombine.high %v554_v35, %v558_v36  ;;  %v559_v39 = vld [vmem:[#allocation8 + $0x428] sm:$0xff]  ;;  %v4441_v40 = vcombine.low %v554_v35, %v558_v36 }
  0xa1   :  { %3720 = vmatprep.subr.bf16.mxu1 %v4380_v42  ;;  %v4443_v41 = vcombine.low %v555_v37, %v559_v39  ;;  %v4444_v42 = vcombine.high %v555_v37, %v559_v39  ;;  %v594_v39 = vld [vmem:[#allocation8 + $0x540] sm:$0xff] }
  0xa3   :  { %3557 = vmatpush1.bf16.msra.mxu0 %v4377_v43  ;;  %v122_v43 = vlaneseq }
  0xa4   :  { %3558 = vmatprep.subr.bf16.mxu0 %v4386_v46  ;;  %3721 = vmatpush1.bf16.msra.mxu1 %v4379_v47  ;;  %v5171_v46 = vld [vmem:[#allocation7] sm:$0xff] }
  0xa5   :  { %3722 = vmatprep.subr.bf16.mxu1 %v4388_v50  ;;  %v5166_v44 = vshrl.u32 %v122_v43, 7 }
  0xa7   :  { %3559 = vmatpush1.bf16.msra.mxu0 %v4385_v51  ;;  %v5169_v45 = vsub.s32 0, %v5166_v44  ;;  %v5174_v47 = vsub.s32 1, %v5166_v44  ;;  %v5177_v48 = vsub.s32 3, %v5166_v44 }
  0xa8   :  { %3560 = vmatprep.subr.bf16.mxu0 %v4394_v54  ;;  %3723 = vmatpush1.bf16.msra.mxu1 %v4387_v55 }
  0xa9   :  { %3724 = vmatprep.subr.bf16.mxu1 %v4396_v58  ;;  %v125_v49 = vrot.slane %v5171_v46, %v5169_v45  ;;  %v129_v50 = vrot.slane %v5171_v46, %v5174_v47  ;;  %v137_v52 = vrot.slane %v5171_v46, %v5177_v48 }
  0xab   :  { %3561 = vmatpush1.bf16.msra.mxu0 %v4393_v59 }
  0xac   :  { %3562 = vmatprep.subr.bf16.mxu0 %v4402_v62  ;;  %3725 = vmatpush1.bf16.msra.mxu1 %v4395_v63  ;;  %v566_v63 = vld [vmem:[#allocation8 + $0x460] sm:$0xff] }
  0xad   :  { %3726 = vmatprep.subr.bf16.mxu1 %v4404_v2  ;;  %v4450_v8 = vcombine.high %v562_v60, %v566_v63 }
  0xaf   :  { %3563 = vmatpush1.bf16.msra.mxu0 %v4401_v3 }
  0xb0   :  { %3564 = vmatprep.subr.bf16.mxu0 %v4410_v6  ;;  %3727 = vmatpush1.bf16.msra.mxu1 %v4403_v7 }
  0xb1   :  { %3728 = vmatprep.subr.bf16.mxu1 %v4412_v10  ;;  %v570_v10 = vld [vmem:[#allocation8 + $0x480] sm:$0xff] }
  0xb3   :  { %3565 = vmatpush1.bf16.msra.mxu0 %v4409_v11  ;;  %v574_v11 = vld [vmem:[#allocation8 + $0x4a0] sm:$0xff] }
  0xb4   :  { %3566 = vmatprep.subr.bf16.mxu0 %v4418_v14  ;;  %3729 = vmatpush1.bf16.msra.mxu1 %v4411_v15  ;;  %v4458_v20 = vcombine.high %v570_v10, %v574_v11  ;;  %v4457_v27 = vcombine.low %v570_v10, %v574_v11  ;;  %v622_v11 = vld [vmem:[#allocation8 + $0x620] sm:$0xff] }
  0xb5   :  { %3730 = vmatprep.subr.bf16.mxu1 %v4420_v16 }
  0xb7   :  { %3567 = vmatpush1.bf16.msra.mxu0 %v4417_v17  ;;  %v4449_v17 = vcombine.low %v562_v60, %v566_v63  ;;  %v614_v63 = vld [vmem:[#allocation8 + $0x5e0] sm:$0xff] }
  0xb8   :  { %3731 = vmatpush1.bf16.msra.mxu1 %v4419_v18  ;;  %3568 = vmatprep.subr.bf16.mxu0 %v4426_v22  ;;  %v4451_v18 = vcombine.low %v563_v0, %v567_v1  ;;  %v578_v22 = vld [vmem:[#allocation8 + $0x4c0] sm:$0xff]  ;;  %v611_v0 = vld [vmem:[#allocation8 + $0x5c8] sm:$0xff] }
  0xb9   :  { %3732 = vmatprep.subr.bf16.mxu1 %v4428_v26  ;;  %v583_v26 = vld [vmem:[#allocation8 + $0x4e8] sm:$0xff] }
  0xba   :  { %v615_v1 = vld [vmem:[#allocation8 + $0x5e8] sm:$0xff] }
  0xbb   :  { %3569 = vmatpush1.bf16.msra.mxu0 %v4425_v24  ;;  %v582_v24 = vld [vmem:[#allocation8 + $0x4e0] sm:$0xff] }
  0xbc   :  { %3733 = vmatpush1.bf16.msra.mxu1 %v4427_v25  ;;  %3570 = vmatprep.subr.bf16.mxu0 %v4434_v30  ;;  %v579_v25 = vld [vmem:[#allocation8 + $0x4c8] sm:$0xff]  ;;  %v4466_v29 = vcombine.high %v578_v22, %v582_v24  ;;  %v4465_v35 = vcombine.low %v578_v22, %v582_v24  ;;  %v626_v22 = vld [vmem:[#allocation8 + $0x640] sm:$0xff] }
  0xbd   :  { %3734 = vmatprep.subr.bf16.mxu1 %v4436_v34  ;;  %v4468_v30 = vcombine.high %v579_v25, %v583_v26  ;;  %v591_v34 = vld [vmem:[#allocation8 + $0x528] sm:$0xff]  ;;  %v4467_v36 = vcombine.low %v579_v25, %v583_v26 }
  0xbe   :  { %v627_v24 = vld [vmem:[#allocation8 + $0x648] sm:$0xff] }
  0xbf   :  { %3571 = vmatpush1.bf16.msra.mxu0 %v4433_v32  ;;  %v590_v32 = vld [vmem:[#allocation8 + $0x520] sm:$0xff]  ;;  %v631_v25 = vld [vmem:[#allocation8 + $0x668] sm:$0xff] }
  0xc0   :  { %3735 = vmatpush1.bf16.msra.mxu1 %v4435_v33  ;;  %3581 = vmatprep.subr.bf16.mxu0 %v4442_v38  ;;  %v587_v33 = vld [vmem:[#allocation8 + $0x508] sm:$0xff]  ;;  %v4474_v37 = vcombine.high %v586_v31, %v590_v32  ;;  %v4473_v43 = vcombine.low %v586_v31, %v590_v32  ;;  %v638_v31 = vld [vmem:[#allocation8 + $0x6a0] sm:$0xff] }
  0xc1   :  { %3745 = vmatprep.subr.bf16.mxu1 %v4444_v42  ;;  %v4476_v38 = vcombine.high %v587_v33, %v591_v34  ;;  %v599_v42 = vld [vmem:[#allocation8 + $0x568] sm:$0xff] }
  0xc2   :  { %v635_v32 = vld [vmem:[#allocation8 + $0x688] sm:$0xff] }
 0x14d   :  { %v280_v51 = vpop.f32.mrb[0].mxu0  ;;  %v5185_v57 = vpop.f32.mrb[0].mxu1 }
 0x14e   :  { %v281_v53 = vadd.f32 %v280_v51, %v125_v49  ;;  %v282_v54 = vpop.f32.mrb[1].mxu0  ;;  %v323_v61 = vpop.f32.mrb[1].mxu1  ;;  %v4475_v49 = vcombine.low %v587_v33, %v591_v34  ;;  %v639_v33 = vld [vmem:[#allocation8 + $0x6a8] sm:$0xff] }
 0x14f   :  { %v283_v55 = vadd.f32 %v282_v54, %v129_v50  ;;  %v284_v56 = vpop.f32.mrb[2].mxu0  ;;  %v324_v2 = vadd.f32 %v323_v61, %v137_v52  ;;  %v325_v3 = vpop.f32.mrb[2].mxu1  ;;  %v602_v52 = vld [vmem:[#allocation8 + $0x580] sm:$0xff]  ;;  %v603_v54 = vld [vmem:[#allocation8 + $0x588] sm:$0xff] }
 0x150   :  { %v410_v58 = vmax.f32 %v281_v53, 0.0  ;;  %v285_v59 = vpop.f32.mrb[3].mxu0  ;;  %v326_v4 = vpop.f32.mrb[3].mxu1  ;;  %v606_v53 = vld [vmem:[#allocation8 + $0x5a0] sm:$0xff] }
 0x151   :  { %v411_v62 = vmax.f32 %v283_v55, 0.0  ;;  %v413_v6 = vmax.f32 %v324_v2, 0.0  ;;  %v607_v55 = vld [vmem:[#allocation8 + $0x5a8] sm:$0xff]  ;;  %v4490_v59 = vcombine.high %v602_v52, %v606_v53  ;;  %v610_v61 = vld [vmem:[#allocation8 + $0x5c0] sm:$0xff]  ;;  %v4489_v2 = vcombine.low %v602_v52, %v606_v53 }
 0x152   :  { %v5189_v7 = vpack.c.bf16 %v410_v58, %v410_v58  ;;  %v4492_v60 = vcombine.high %v603_v54, %v607_v55  ;;  %v4491_v3 = vcombine.low %v603_v54, %v607_v55  ;;  %v654_v52 = vld [vmem:[#allocation8 + $0x720] sm:$0xff]  ;;  %v651_v53 = vld [vmem:[#allocation8 + $0x708] sm:$0xff] }
 0x153   :  { %v5187_v5 = vpack.c.bf16 %v411_v62, %v411_v62  ;;  %v5193_v14 = vpack.c.bf16 %v413_v6, %v413_v6  ;;  %v4498_v6 = vcombine.high %v610_v61, %v614_v63  ;;  %v655_v54 = vld [vmem:[#allocation8 + $0x728] sm:$0xff] }
 0x155   :  { %3572 = vmatprep.mubr.bf16.mxu0 %v5187_v5  ;;  %3736 = vmatprep.mubr.bf16.mxu1 %v5187_v5  ;;  %v5195_v15 = vpop.f32.mrb[4].mxu0 }
 0x156   :  { %3573 = vmatmul.mubr.bf16.vlgmr.msra.gmra.mrb[8].mxu0 %v5189_v7  ;;  %3737 = vmatmul.mubr.bf16.vlgmr.msra.gmra.mrb[8].mxu1 %v5189_v7  ;;  %v5199_v16 = vpop.f32.mrb[5].mxu0  ;;  %v5203_v62 = vpop.f32.mrb[4].mxu1 }
 0x157   :  { %3582 = vmatpush1.bf16.msra.mxu0 %v4441_v40  ;;  %3746 = vmatpush1.bf16.msra.mxu1 %v4443_v41  ;;  %v366_v19 = vpop.f32.mrb[6].mxu0  ;;  %v598_v40 = vld [vmem:[#allocation8 + $0x560] sm:$0xff]  ;;  %v595_v41 = vld [vmem:[#allocation8 + $0x548] sm:$0xff]  ;;  %v5205_v4 = vpop.f32.mrb[5].mxu1 }
 0x158   :  { %3583 = vmatprep.subr.bf16.mxu0 %v4450_v8  ;;  %3747 = vmatprep.subr.bf16.mxu1 %v4452_v9  ;;  %v367_v23 = vpop.f32.mrb[7].mxu0  ;;  %v4482_v50 = vcombine.high %v594_v39, %v598_v40  ;;  %v4484_v51 = vcombine.high %v595_v41, %v599_v42  ;;  %v4481_v56 = vcombine.low %v594_v39, %v598_v40  ;;  %v618_v9 = vld [vmem:[#allocation8 + $0x600] sm:$0xff]  ;;  %v407_v10 = vpop.f32.mrb[6].mxu1  ;;  %v643_v40 = vld [vmem:[#allocation8 + $0x6c8] sm:$0xff] }
 0x159   :  { %3613 = vmatprep.mubr.bf16.mxu0 %v5193_v14  ;;  %3777 = vmatprep.mubr.bf16.mxu1 %v5193_v14  ;;  %v4483_v58 = vcombine.low %v595_v41, %v599_v42  ;;  %v4500_v8 = vcombine.high %v611_v0, %v615_v1  ;;  %v4499_v19 = vcombine.low %v611_v0, %v615_v1  ;;  %v630_v23 = vld [vmem:[#allocation8 + $0x660] sm:$0xff]  ;;  %v647_v41 = vld [vmem:[#allocation8 + $0x6e8] sm:$0xff]  ;;  %v5208_v1 = vsub.s32 2, %v5166_v44 }
 0x15a   :  { %v4505_v26 = vcombine.low %v618_v9, %v622_v11  ;;  %v4513_v34 = vcombine.low %v626_v22, %v630_v23  ;;  %v646_v39 = vld [vmem:[#allocation8 + $0x6e0] sm:$0xff]  ;;  %v663_v0 = vld [vmem:[#allocation8 + $0x768] sm:$0xff] }
 0x15b   :  { %3584 = vmatpush1.bf16.msra.mxu0 %v4449_v17  ;;  %3748 = vmatpush1.bf16.msra.mxu1 %v4451_v18  ;;  %v408_v17 = vpop.f32.mrb[7].mxu1  ;;  %v4497_v18 = vcombine.low %v610_v61, %v614_v63  ;;  %v662_v61 = vld [vmem:[#allocation8 + $0x760] sm:$0xff]  ;;  %v659_v63 = vld [vmem:[#allocation8 + $0x748] sm:$0xff] }
 0x15c   :  { %3585 = vmatprep.subr.bf16.mxu0 %v4458_v20  ;;  %3749 = vmatprep.subr.bf16.mxu1 %v4460_v21  ;;  %v4506_v20 = vcombine.high %v618_v9, %v622_v11  ;;  %v4508_v21 = vcombine.high %v619_v12, %v623_v13  ;;  %v666_v9 = vld [vmem:[#allocation8 + $0x780] sm:$0xff]  ;;  %v667_v11 = vld [vmem:[#allocation8 + $0x788] sm:$0xff]  ;;  %v133_v17 = vrot.slane %v5171_v46, %v5208_v1 }
 0x15d   :  { %v670_v10 = vld [vmem:[#allocation8 + $0x7a0] sm:$0xff] }
 0x15f   :  { %3586 = vmatpush1.bf16.msra.mxu0 %v4457_v27  ;;  %3750 = vmatpush1.bf16.msra.mxu1 %v4459_v28  ;;  %v4507_v27 = vcombine.low %v619_v12, %v623_v13  ;;  %v4514_v28 = vcombine.high %v626_v22, %v630_v23  ;;  %v671_v12 = vld [vmem:[#allocation8 + $0x7a8] sm:$0xff]  ;;  %v5211_v13 = vsub.s32 5, %v5166_v44  ;;  %v674_v22 = vld [vmem:[#allocation8 + $0x7c0] sm:$0xff] }
 0x160   :  { %3587 = vmatprep.subr.bf16.mxu0 %v4466_v29  ;;  %3751 = vmatprep.subr.bf16.mxu1 %v4468_v30  ;;  %v4516_v29 = vcombine.high %v627_v24, %v631_v25  ;;  %v634_v30 = vld [vmem:[#allocation8 + $0x680] sm:$0xff] }
 0x161   :  { %v4521_v42 = vcombine.low %v634_v30, %v638_v31  ;;  %v678_v23 = vld [vmem:[#allocation8 + $0x7e0] sm:$0xff] }
 0x163   :  { %3588 = vmatpush1.bf16.msra.mxu0 %v4465_v35  ;;  %3752 = vmatpush1.bf16.msra.mxu1 %v4467_v36  ;;  %v4515_v35 = vcombine.low %v627_v24, %v631_v25  ;;  %v4522_v36 = vcombine.high %v634_v30, %v638_v31  ;;  %v675_v24 = vld [vmem:[#allocation8 + $0x7c8] sm:$0xff]  ;;  %v4562_v30 = vcombine.high %v674_v22, %v678_v23 }
 0x164   :  { %3589 = vmatprep.subr.bf16.mxu0 %v4474_v37  ;;  %3753 = vmatprep.subr.bf16.mxu1 %v4476_v38  ;;  %v4524_v37 = vcombine.high %v635_v32, %v639_v33  ;;  %v642_v38 = vld [vmem:[#allocation8 + $0x6c0] sm:$0xff]  ;;  %v679_v25 = vld [vmem:[#allocation8 + $0x7e8] sm:$0xff] }
 0x165   :  { %v4529_v55 = vcombine.low %v642_v38, %v646_v39  ;;  %v4564_v31 = vcombine.high %v675_v24, %v679_v25 }
 0x167   :  { %3590 = vmatpush1.bf16.msra.mxu0 %v4473_v43  ;;  %3754 = vmatpush1.bf16.msra.mxu1 %v4475_v49  ;;  %v4523_v43 = vcombine.low %v635_v32, %v639_v33  ;;  %v4530_v49 = vcombine.high %v642_v38, %v646_v39  ;;  %v682_v32 = vld [vmem:[#allocation8 + $0x800] sm:$0xff]  ;;  %v4561_v38 = vcombine.low %v674_v22, %v678_v23 }
 0x168   :  { %3591 = vmatprep.subr.bf16.mxu0 %v4482_v50  ;;  %3755 = vmatprep.subr.bf16.mxu1 %v4484_v51  ;;  %v4532_v50 = vcombine.high %v643_v40, %v647_v41  ;;  %v650_v51 = vld [vmem:[#allocation8 + $0x700] sm:$0xff]  ;;  %v4563_v39 = vcombine.low %v675_v24, %v679_v25 }
 0x169   :  { %v686_v33 = vld [vmem:[#allocation8 + $0x820] sm:$0xff] }
 0x16b   :  { %3592 = vmatpush1.bf16.msra.mxu0 %v4481_v56  ;;  %3756 = vmatpush1.bf16.msra.mxu1 %v4483_v58  ;;  %v4531_v56 = vcombine.low %v643_v40, %v647_v41  ;;  %v4538_v58 = vcombine.high %v650_v51, %v654_v52  ;;  %v690_v41 = vld [vmem:[#allocation8 + $0x840] sm:$0xff] }
 0x16c   :  { %3593 = vmatprep.subr.bf16.mxu0 %v4490_v59  ;;  %3757 = vmatprep.subr.bf16.mxu1 %v4492_v60  ;;  %v4540_v59 = vcombine.high %v651_v53, %v655_v54  ;;  %v658_v60 = vld [vmem:[#allocation8 + $0x740] sm:$0xff] }
 0x16f   :  { %3594 = vmatpush1.bf16.msra.mxu0 %v4489_v2  ;;  %3758 = vmatpush1.bf16.msra.mxu1 %v4491_v3  ;;  %v4537_v2 = vcombine.low %v650_v51, %v654_v52  ;;  %v4539_v3 = vcombine.low %v651_v53, %v655_v54  ;;  %v4569_v52 = vcombine.low %v682_v32, %v686_v33 }
 0x170   :  { %3595 = vmatprep.subr.bf16.mxu0 %v4498_v6  ;;  %3759 = vmatprep.subr.bf16.mxu1 %v4500_v8  ;;  %v4546_v6 = vcombine.high %v658_v60, %v662_v61  ;;  %v4548_v8 = vcombine.high %v659_v63, %v663_v0 }
 0x173   :  { %3596 = vmatpush1.bf16.msra.mxu0 %v4497_v18  ;;  %3760 = vmatpush1.bf16.msra.mxu1 %v4499_v19  ;;  %v4545_v18 = vcombine.low %v658_v60, %v662_v61  ;;  %v4547_v19 = vcombine.low %v659_v63, %v663_v0 }
 0x174   :  { %3597 = vmatprep.subr.bf16.mxu0 %v4506_v20  ;;  %3761 = vmatprep.subr.bf16.mxu1 %v4508_v21  ;;  %v4554_v20 = vcombine.high %v666_v9, %v670_v10  ;;  %v4556_v21 = vcombine.high %v667_v11, %v671_v12 }
 0x177   :  { %3598 = vmatpush1.bf16.msra.mxu0 %v4505_v26  ;;  %3762 = vmatpush1.bf16.msra.mxu1 %v4507_v27  ;;  %v145_v26 = vrot.slane %v5171_v46, %v5211_v13  ;;  %v322_v27 = vadd.f32 %v5185_v57, %v133_v17  ;;  %v4570_v57 = vcombine.high %v682_v32, %v686_v33 }
 0x178   :  { %3599 = vmatprep.subr.bf16.mxu0 %v4514_v28  ;;  %3763 = vmatprep.subr.bf16.mxu1 %v4516_v29  ;;  %v4553_v28 = vcombine.low %v666_v9, %v670_v10  ;;  %v4555_v29 = vcombine.low %v667_v11, %v671_v12  ;;  %v711_v9 = vld [vmem:[#allocation8 + $0x8e8] sm:$0xff] }
 0x17b   :  { %3600 = vmatpush1.bf16.msra.mxu0 %v4513_v34  ;;  %3764 = vmatpush1.bf16.msra.mxu1 %v4515_v35  ;;  %v683_v34 = vld [vmem:[#allocation8 + $0x808] sm:$0xff] }
 0x17c   :  { %3601 = vmatprep.subr.bf16.mxu0 %v4522_v36  ;;  %3765 = vmatprep.subr.bf16.mxu1 %v4524_v37  ;;  %v687_v35 = vld [vmem:[#allocation8 + $0x828] sm:$0xff]  ;;  %v365_v36 = vadd.f32 %v5199_v16, %v145_v26  ;;  %v412_v37 = vmax.f32 %v322_v27, 0.0  ;;  %v722_v26 = vld [vmem:[#allocation8 + $0x940] sm:$0xff] }
 0x17d   :  { %v4572_v40 = vcombine.high %v683_v34, %v687_v35  ;;  %v4571_v16 = vcombine.low %v683_v34, %v687_v35  ;;  %v726_v27 = vld [vmem:[#allocation8 + $0x960] sm:$0xff] }
 0x17e   :  { %v5219_v51 = vpack.c.bf16 %v412_v37, %v412_v37  ;;  %v4610_v32 = vcombine.high %v722_v26, %v726_v27  ;;  %v730_v34 = vld [vmem:[#allocation8 + $0x980] sm:$0xff]  ;;  %v735_v37 = vld [vmem:[#allocation8 + $0x9a8] sm:$0xff] }
 0x17f   :  { %3602 = vmatpush1.bf16.msra.mxu0 %v4521_v42  ;;  %3766 = vmatpush1.bf16.msra.mxu1 %v4523_v43  ;;  %v694_v42 = vld [vmem:[#allocation8 + $0x860] sm:$0xff]  ;;  %v691_v43 = vld [vmem:[#allocation8 + $0x848] sm:$0xff] }
 0x180   :  { %3603 = vmatprep.subr.bf16.mxu0 %v4530_v49  ;;  %3767 = vmatprep.subr.bf16.mxu1 %v4532_v50  ;;  %v695_v49 = vld [vmem:[#allocation8 + $0x868] sm:$0xff]  ;;  %v415_v50 = vmax.f32 %v365_v36, 0.0  ;;  %v4578_v53 = vcombine.high %v690_v41, %v694_v42  ;;  %v4577_v61 = vcombine.low %v690_v41, %v694_v42  ;;  %v734_v35 = vld [vmem:[#allocation8 + $0x9a0] sm:$0xff] }
 0x181   :  { %v4580_v54 = vcombine.high %v691_v43, %v695_v49  ;;  %v4579_v63 = vcombine.low %v691_v43, %v695_v49  ;;  %v731_v36 = vld [vmem:[#allocation8 + $0x988] sm:$0xff]  ;;  %v738_v41 = vld [vmem:[#allocation8 + $0x9c0] sm:$0xff] }
 0x182   :  { %v5221_v60 = vpack.c.bf16 %v415_v50, %v415_v50  ;;  %v742_v42 = vld [vmem:[#allocation8 + $0x9e0] sm:$0xff]  ;;  %v739_v43 = vld [vmem:[#allocation8 + $0x9c8] sm:$0xff]  ;;  %v4617_v50 = vcombine.low %v730_v34, %v734_v35 }
 0x183   :  { %3604 = vmatpush1.bf16.msra.mxu0 %v4529_v55  ;;  %3768 = vmatpush1.bf16.msra.mxu1 %v4531_v56  ;;  %v698_v55 = vld [vmem:[#allocation8 + $0x880] sm:$0xff]  ;;  %v743_v49 = vld [vmem:[#allocation8 + $0x9e8] sm:$0xff] }
 0x184   :  { %3605 = vmatprep.subr.bf16.mxu0 %v4538_v58  ;;  %3769 = vmatprep.subr.bf16.mxu1 %v4540_v59  ;;  %v702_v56 = vld [vmem:[#allocation8 + $0x8a0] sm:$0xff]  ;;  %v699_v58 = vld [vmem:[#allocation8 + $0x888] sm:$0xff] }
 0x185   :  { %v703_v59 = vld [vmem:[#allocation8 + $0x8a8] sm:$0xff]  ;;  %v4586_v0 = vcombine.high %v698_v55, %v702_v56  ;;  %v4585_v10 = vcombine.low %v698_v55, %v702_v56  ;;  %v750_v55 = vld [vmem:[#allocation8 + $0xa20] sm:$0xff] }
 0x186   :  { %v4587_v11 = vcombine.low %v699_v58, %v703_v59  ;;  %v747_v56 = vld [vmem:[#allocation8 + $0xa08] sm:$0xff] }
 0x187   :  { %3606 = vmatpush1.bf16.msra.mxu0 %v4537_v2  ;;  %3770 = vmatpush1.bf16.msra.mxu1 %v4539_v3  ;;  %v4588_v2 = vcombine.high %v699_v58, %v703_v59  ;;  %v706_v3 = vld [vmem:[#allocation8 + $0x8c0] sm:$0xff]  ;;  %v751_v58 = vld [vmem:[#allocation8 + $0xa28] sm:$0xff]  ;;  %v4625_v59 = vcombine.low %v738_v41, %v742_v42 }
 0x188   :  { %3607 = vmatprep.subr.bf16.mxu0 %v4546_v6  ;;  %3771 = vmatprep.subr.bf16.mxu1 %v4548_v8  ;;  %v710_v6 = vld [vmem:[#allocation8 + $0x8e0] sm:$0xff]  ;;  %v707_v8 = vld [vmem:[#allocation8 + $0x8c8] sm:$0xff] }
 0x189   :  { %v4594_v12 = vcombine.high %v706_v3, %v710_v6  ;;  %v4596_v17 = vcombine.high %v707_v8, %v711_v9  ;;  %v4593_v22 = vcombine.low %v706_v3, %v710_v6  ;;  %v4595_v23 = vcombine.low %v707_v8, %v711_v9  ;;  %v758_v3 = vld [vmem:[#allocation8 + $0xa60] sm:$0xff]  ;;  %v755_v6 = vld [vmem:[#allocation8 + $0xa48] sm:$0xff] }
 0x18a   :  { %v759_v8 = vld [vmem:[#allocation8 + $0xa68] sm:$0xff] }
 0x18b   :  { %3608 = vmatpush1.bf16.msra.mxu0 %v4545_v18  ;;  %3772 = vmatpush1.bf16.msra.mxu1 %v4547_v19  ;;  %v714_v18 = vld [vmem:[#allocation8 + $0x900] sm:$0xff] }
 0x18c   :  { %3609 = vmatprep.subr.bf16.mxu0 %v4554_v20  ;;  %3773 = vmatprep.subr.bf16.mxu1 %v4556_v21  ;;  %v718_v19 = vld [vmem:[#allocation8 + $0x920] sm:$0xff]  ;;  %v715_v20 = vld [vmem:[#allocation8 + $0x908] sm:$0xff] }
 0x18d   :  { %v719_v21 = vld [vmem:[#allocation8 + $0x928] sm:$0xff]  ;;  %v4602_v24 = vcombine.high %v714_v18, %v718_v19 }
 0x18e   :  { %v4604_v25 = vcombine.high %v715_v20, %v719_v21 }
 0x18f   :  { %3610 = vmatpush1.bf16.msra.mxu0 %v4553_v28  ;;  %3774 = vmatpush1.bf16.msra.mxu1 %v4555_v29  ;;  %v723_v28 = vld [vmem:[#allocation8 + $0x948] sm:$0xff] }
 0x190   :  { %3611 = vmatprep.subr.bf16.mxu0 %v4562_v30  ;;  %3775 = vmatprep.subr.bf16.mxu1 %v4564_v31  ;;  %v727_v29 = vld [vmem:[#allocation8 + $0x968] sm:$0xff]  ;;  %v4601_v30 = vcombine.low %v714_v18, %v718_v19  ;;  %v4603_v31 = vcombine.low %v715_v20, %v719_v21  ;;  %v766_v18 = vld [vmem:[#allocation8 + $0xaa0] sm:$0xff] }
 0x191   :  { %v4612_v33 = vcombine.high %v723_v28, %v727_v29  ;;  %v763_v19 = vld [vmem:[#allocation8 + $0xa88] sm:$0xff] }
 0x192   :  { %v767_v20 = vld [vmem:[#allocation8 + $0xaa8] sm:$0xff] }
 0x193   :  { %3612 = vmatpush1.bf16.msra.mxu0 %v4561_v38  ;;  %3776 = vmatpush1.bf16.msra.mxu1 %v4563_v39  ;;  %v4609_v38 = vcombine.low %v722_v26, %v726_v27  ;;  %v4611_v39 = vcombine.low %v723_v28, %v727_v29  ;;  %v774_v26 = vld [vmem:[#allocation8 + $0xae0] sm:$0xff]  ;;  %v771_v27 = vld [vmem:[#allocation8 + $0xac8] sm:$0xff] }
 0x194   :  { %3622 = vmatprep.subr.bf16.mxu0 %v4570_v57  ;;  %3786 = vmatprep.subr.bf16.mxu1 %v4572_v40  ;;  %v4618_v57 = vcombine.high %v730_v34, %v734_v35  ;;  %v4620_v40 = vcombine.high %v731_v36, %v735_v37  ;;  %v775_v28 = vld [vmem:[#allocation8 + $0xae8] sm:$0xff]  ;;  %v782_v34 = vld [vmem:[#allocation8 + $0xb20] sm:$0xff] }
 0x195   :  { %v779_v35 = vld [vmem:[#allocation8 + $0xb08] sm:$0xff] }
 0x196   :  { %3614 = vmatmul.mubr.bf16.vlgmr.msra.gmra.mrb[8].mxu0 %v5219_v51  ;;  %3778 = vmatmul.mubr.bf16.vlgmr.msra.gmra.mrb[8].mxu1 %v5219_v51 }
 0x197   :  { %3623 = vmatpush1.bf16.msra.mxu0 %v4569_v52  ;;  %3787 = vmatpush1.bf16.msra.mxu1 %v4571_v16  ;;  %v4619_v52 = vcombine.low %v731_v36, %v735_v37  ;;  %v4626_v16 = vcombine.high %v738_v41, %v742_v42  ;;  %v783_v36 = vld [vmem:[#allocation8 + $0xb28] sm:$0xff]  ;;  %v790_v41 = vld [vmem:[#allocation8 + $0xb60] sm:$0xff] }
 0x198   :  { %3624 = vmatprep.subr.bf16.mxu0 %v4578_v53  ;;  %3788 = vmatprep.subr.bf16.mxu1 %v4580_v54  ;;  %v4628_v53 = vcombine.high %v739_v43, %v743_v49  ;;  %v746_v54 = vld [vmem:[#allocation8 + $0xa00] sm:$0xff]  ;;  %v787_v42 = vld [vmem:[#allocation8 + $0xb48] sm:$0xff] }
 0x199   :  { %3654 = vmatprep.mubr.bf16.mxu0 %v5221_v60  ;;  %3818 = vmatprep.mubr.bf16.mxu1 %v5221_v60  ;;  %v4633_v9 = vcombine.low %v746_v54, %v750_v55 }
 0x19b   :  { %3625 = vmatpush1.bf16.msra.mxu0 %v4577_v61  ;;  %3789 = vmatpush1.bf16.msra.mxu1 %v4579_v63  ;;  %v4627_v61 = vcombine.low %v739_v43, %v743_v49  ;;  %v4634_v63 = vcombine.high %v746_v54, %v750_v55  ;;  %v791_v43 = vld [vmem:[#allocation8 + $0xb68] sm:$0xff]  ;;  %v5228_v49 = vsub.s32 4, %v5166_v44  ;;  %v794_v54 = vld [vmem:[#allocation8 + $0xb80] sm:$0xff] }
 0x19c   :  { %3626 = vmatprep.subr.bf16.mxu0 %v4586_v0  ;;  %3790 = vmatprep.subr.bf16.mxu1 %v4588_v2  ;;  %v4636_v0 = vcombine.high %v747_v56, %v751_v58  ;;  %v754_v2 = vld [vmem:[#allocation8 + $0xa40] sm:$0xff] }
 0x19d   :  { %v4641_v21 = vcombine.low %v754_v2, %v758_v3  ;;  %v798_v55 = vld [vmem:[#allocation8 + $0xba0] sm:$0xff] }
 0x19f   :  { %3627 = vmatpush1.bf16.msra.mxu0 %v4585_v10  ;;  %3791 = vmatpush1.bf16.msra.mxu1 %v4587_v11  ;;  %v4635_v10 = vcombine.low %v747_v56, %v751_v58  ;;  %v4642_v11 = vcombine.high %v754_v2, %v758_v3  ;;  %v795_v56 = vld [vmem:[#allocation8 + $0xb88] sm:$0xff]  ;;  %v4682_v2 = vcombine.high %v794_v54, %v798_v55 }
 0x1a0   :  { %3628 = vmatprep.subr.bf16.mxu0 %v4594_v12  ;;  %3792 = vmatprep.subr.bf16.mxu1 %v4596_v17  ;;  %v4644_v12 = vcombine.high %v755_v6, %v759_v8  ;;  %v762_v17 = vld [vmem:[#allocation8 + $0xa80] sm:$0xff]  ;;  %v799_v58 = vld [vmem:[#allocation8 + $0xba8] sm:$0xff] }
 0x1a1   :  { %v4649_v29 = vcombine.low %v762_v17, %v766_v18  ;;  %v4684_v3 = vcombine.high %v795_v56, %v799_v58 }
 0x1a3   :  { %3629 = vmatpush1.bf16.msra.mxu0 %v4593_v22  ;;  %3793 = vmatpush1.bf16.msra.mxu1 %v4595_v23  ;;  %v4643_v22 = vcombine.low %v755_v6, %v759_v8  ;;  %v4650_v23 = vcombine.high %v762_v17, %v766_v18  ;;  %v802_v6 = vld [vmem:[#allocation8 + $0xbc0] sm:$0xff]  ;;  %v4681_v17 = vcombine.low %v794_v54, %v798_v55  ;;  %v835_v54 = vld [vmem:[#allocation8 + $0xcc8] sm:$0xff] }
 0x1a4   :  { %3630 = vmatprep.subr.bf16.mxu0 %v4602_v24  ;;  %3794 = vmatprep.subr.bf16.mxu1 %v4604_v25  ;;  %v4652_v24 = vcombine.high %v763_v19, %v767_v20  ;;  %v770_v25 = vld [vmem:[#allocation8 + $0xac0] sm:$0xff]  ;;  %v4683_v18 = vcombine.low %v795_v56, %v799_v58  ;;  %v839_v55 = vld [vmem:[#allocation8 + $0xce8] sm:$0xff] }
 0x1a5   :  { %v4657_v37 = vcombine.low %v770_v25, %v774_v26  ;;  %v806_v8 = vld [vmem:[#allocation8 + $0xbe0] sm:$0xff] }
 0x1a7   :  { %3631 = vmatpush1.bf16.msra.mxu0 %v4601_v30  ;;  %3795 = vmatpush1.bf16.msra.mxu1 %v4603_v31  ;;  %v4651_v30 = vcombine.low %v763_v19, %v767_v20  ;;  %v4658_v31 = vcombine.high %v770_v25, %v774_v26  ;;  %v4690_v19 = vcombine.high %v802_v6, %v806_v8 }
 0x1a8   :  { %3632 = vmatprep.subr.bf16.mxu0 %v4610_v32  ;;  %3796 = vmatprep.subr.bf16.mxu1 %v4612_v33  ;;  %v4660_v32 = vcombine.high %v771_v27, %v775_v28  ;;  %v778_v33 = vld [vmem:[#allocation8 + $0xb00] sm:$0xff] }
 0x1ab   :  { %3633 = vmatpush1.bf16.msra.mxu0 %v4609_v38  ;;  %3797 = vmatpush1.bf16.msra.mxu1 %v4611_v39  ;;  %v4659_v38 = vcombine.low %v771_v27, %v775_v28  ;;  %v4666_v39 = vcombine.high %v778_v33, %v782_v34 }
 0x1ac   :  { %3634 = vmatprep.subr.bf16.mxu0 %v4618_v57  ;;  %3798 = vmatprep.subr.bf16.mxu1 %v4620_v40  ;;  %v4668_v57 = vcombine.high %v779_v35, %v783_v36  ;;  %v786_v40 = vld [vmem:[#allocation8 + $0xb40] sm:$0xff] }
 0x1af   :  { %3635 = vmatpush1.bf16.msra.mxu0 %v4617_v50  ;;  %3799 = vmatpush1.bf16.msra.mxu1 %v4619_v52  ;;  %v4665_v50 = vcombine.low %v778_v33, %v782_v34  ;;  %v4667_v52 = vcombine.low %v779_v35, %v783_v36 }
 0x1b0   :  { %3636 = vmatprep.subr.bf16.mxu0 %v4626_v16  ;;  %3800 = vmatprep.subr.bf16.mxu1 %v4628_v53  ;;  %v4674_v16 = vcombine.high %v786_v40, %v790_v41  ;;  %v4676_v53 = vcombine.high %v787_v42, %v791_v43 }
 0x1b3   :  { %3637 = vmatpush1.bf16.msra.mxu0 %v4625_v59  ;;  %3801 = vmatpush1.bf16.msra.mxu1 %v4627_v61  ;;  %v5231_v59 = vsub.s32 7, %v5166_v44  ;;  %v141_v61 = vrot.slane %v5171_v46, %v5228_v49 }
 0x1b4   :  { %3638 = vmatprep.subr.bf16.mxu0 %v4634_v63  ;;  %3802 = vmatprep.subr.bf16.mxu1 %v4636_v0  ;;  %v4673_v63 = vcombine.low %v786_v40, %v790_v41  ;;  %v4675_v0 = vcombine.low %v787_v42, %v791_v43  ;;  %v831_v40 = vld [vmem:[#allocation8 + $0xca8] sm:$0xff] }
 0x1b7   :  { %3639 = vmatpush1.bf16.msra.mxu0 %v4633_v9  ;;  %3803 = vmatpush1.bf16.msra.mxu1 %v4635_v10  ;;  %v803_v9 = vld [vmem:[#allocation8 + $0xbc8] sm:$0xff] }
 0x1b8   :  { %3640 = vmatprep.subr.bf16.mxu0 %v4642_v11  ;;  %3804 = vmatprep.subr.bf16.mxu1 %v4644_v12  ;;  %v807_v10 = vld [vmem:[#allocation8 + $0xbe8] sm:$0xff]  ;;  %v153_v11 = vrot.slane %v5171_v46, %v5231_v59  ;;  %v363_v12 = vadd.f32 %v5195_v15, %v141_v61  ;;  %v4689_v46 = vcombine.low %v802_v6, %v806_v8 }
 0x1b9   :  { %v4692_v20 = vcombine.high %v803_v9, %v807_v10  ;;  %v4691_v27 = vcombine.low %v803_v9, %v807_v10  ;;  %v847_v6 = vld [vmem:[#allocation8 + $0xd28] sm:$0xff]  ;;  %v4723_v9 = vcombine.low %v835_v54, %v839_v55 }
 0x1ba   :  { %v406_v25 = vadd.f32 %v5205_v4, %v153_v11  ;;  %v414_v26 = vmax.f32 %v363_v12, 0.0  ;;  %v850_v12 = vld [vmem:[#allocation8 + $0xd40] sm:$0xff] }
 0x1bb   :  { %3641 = vmatpush1.bf16.msra.mxu0 %v4641_v21  ;;  %3805 = vmatpush1.bf16.msra.mxu1 %v4643_v22  ;;  %v810_v21 = vld [vmem:[#allocation8 + $0xc00] sm:$0xff] }
 0x1bc   :  { %3642 = vmatprep.subr.bf16.mxu0 %v4650_v23  ;;  %3806 = vmatprep.subr.bf16.mxu1 %v4652_v24  ;;  %v814_v22 = vld [vmem:[#allocation8 + $0xc20] sm:$0xff]  ;;  %v811_v23 = vld [vmem:[#allocation8 + $0xc08] sm:$0xff]  ;;  %v417_v33 = vmax.f32 %v406_v25, 0.0  ;;  %v5239_v34 = vpack.c.bf16 %v414_v26, %v414_v26 }
 0x1bd   :  { %v815_v24 = vld [vmem:[#allocation8 + $0xc28] sm:$0xff]  ;;  %v4698_v15 = vcombine.high %v810_v21, %v814_v22  ;;  %v4697_v35 = vcombine.low %v810_v21, %v814_v22  ;;  %v862_v25 = vld [vmem:[#allocation8 + $0xda0] sm:$0xff] }
 0x1be   :  { %v4700_v28 = vcombine.high %v811_v23, %v815_v24  ;;  %v4699_v4 = vcombine.low %v811_v23, %v815_v24  ;;  %v5241_v41 = vpack.c.bf16 %v417_v33, %v417_v33  ;;  %v858_v24 = vld [vmem:[#allocation8 + $0xd80] sm:$0xff]  ;;  %v859_v26 = vld [vmem:[#allocation8 + $0xd88] sm:$0xff] }
 0x1bf   :  { %3643 = vmatpush1.bf16.msra.mxu0 %v4649_v29  ;;  %3807 = vmatpush1.bf16.msra.mxu1 %v4651_v30  ;;  %v818_v29 = vld [vmem:[#allocation8 + $0xc40] sm:$0xff]  ;;  %v871_v33 = vld [vmem:[#allocation8 + $0xde8] sm:$0xff] }
 0x1c0   :  { %3644 = vmatprep.subr.bf16.mxu0 %v4658_v31  ;;  %3808 = vmatprep.subr.bf16.mxu1 %v4660_v32  ;;  %v822_v30 = vld [vmem:[#allocation8 + $0xc60] sm:$0xff]  ;;  %v819_v31 = vld [vmem:[#allocation8 + $0xc48] sm:$0xff] }
 0x1c1   :  { %v823_v32 = vld [vmem:[#allocation8 + $0xc68] sm:$0xff]  ;;  %v4706_v36 = vcombine.high %v818_v29, %v822_v30  ;;  %v4705_v42 = vcombine.low %v818_v29, %v822_v30  ;;  %v866_v30 = vld [vmem:[#allocation8 + $0xdc0] sm:$0xff] }
 0x1c2   :  { %v4707_v43 = vcombine.low %v819_v31, %v823_v32 }
 0x1c3   :  { %3645 = vmatpush1.bf16.msra.mxu0 %v4657_v37  ;;  %3809 = vmatpush1.bf16.msra.mxu1 %v4659_v38  ;;  %v4708_v37 = vcombine.high %v819_v31, %v823_v32  ;;  %v826_v38 = vld [vmem:[#allocation8 + $0xc80] sm:$0xff]  ;;  %v867_v32 = vld [vmem:[#allocation8 + $0xdc8] sm:$0xff] }
 0x1c4   :  { %3646 = vmatprep.subr.bf16.mxu0 %v4666_v39  ;;  %3810 = vmatprep.subr.bf16.mxu1 %v4668_v57  ;;  %v830_v39 = vld [vmem:[#allocation8 + $0xca0] sm:$0xff]  ;;  %v827_v57 = vld [vmem:[#allocation8 + $0xc88] sm:$0xff] }
 0x1c5   :  { %v4713_v56 = vcombine.low %v826_v38, %v830_v39  ;;  %v4715_v58 = vcombine.low %v827_v57, %v831_v40  ;;  %v870_v31 = vld [vmem:[#allocation8 + $0xde0] sm:$0xff] }
 0x1c7   :  { %3647 = vmatpush1.bf16.msra.mxu0 %v4665_v50  ;;  %3811 = vmatpush1.bf16.msra.mxu1 %v4667_v52  ;;  %v4714_v50 = vcombine.high %v826_v38, %v830_v39  ;;  %v4716_v52 = vcombine.high %v827_v57, %v831_v40  ;;  %v874_v38 = vld [vmem:[#allocation8 + $0xe00] sm:$0xff]  ;;  %v875_v57 = vld [vmem:[#allocation8 + $0xe08] sm:$0xff] }
 0x1c8   :  { %3648 = vmatprep.subr.bf16.mxu0 %v4674_v16  ;;  %3812 = vmatprep.subr.bf16.mxu1 %v4676_v53  ;;  %v834_v16 = vld [vmem:[#allocation8 + $0xcc0] sm:$0xff]  ;;  %v879_v40 = vld [vmem:[#allocation8 + $0xe28] sm:$0xff] }
 0x1c9   :  { %v838_v53 = vld [vmem:[#allocation8 + $0xce0] sm:$0xff] }
 0x1ca   :  { %v4722_v61 = vcombine.high %v834_v16, %v838_v53  ;;  %v4721_v8 = vcombine.low %v834_v16, %v838_v53  ;;  %v878_v39 = vld [vmem:[#allocation8 + $0xe20] sm:$0xff] }
 0x1cb   :  { %3649 = vmatpush1.bf16.msra.mxu0 %v4673_v63  ;;  %3813 = vmatpush1.bf16.msra.mxu1 %v4675_v0  ;;  %v4724_v63 = vcombine.high %v835_v54, %v839_v55  ;;  %v842_v0 = vld [vmem:[#allocation8 + $0xd00] sm:$0xff]  ;;  %v883_v54 = vld [vmem:[#allocation8 + $0xe48] sm:$0xff] }
 0x1cc   :  { %3650 = vmatprep.subr.bf16.mxu0 %v4682_v2  ;;  %3814 = vmatprep.subr.bf16.mxu1 %v4684_v3  ;;  %v846_v2 = vld [vmem:[#allocation8 + $0xd20] sm:$0xff]  ;;  %v843_v3 = vld [vmem:[#allocation8 + $0xd08] sm:$0xff] }
 0x1cd   :  { %v4730_v10 = vcombine.high %v842_v0, %v846_v2  ;;  %v4732_v11 = vcombine.high %v843_v3, %v847_v6  ;;  %v4731_v21 = vcombine.low %v843_v3, %v847_v6  ;;  %v882_v16 = vld [vmem:[#allocation8 + $0xe40] sm:$0xff]  ;;  %v887_v55 = vld [vmem:[#allocation8 + $0xe68] sm:$0xff] }
 0x1ce   :  { %v886_v53 = vld [vmem:[#allocation8 + $0xe60] sm:$0xff]  ;;  %v891_v3 = vld [vmem:[#allocation8 + $0xe88] sm:$0xff] }
 0x1cf   :  { %3651 = vmatpush1.bf16.msra.mxu0 %v4681_v17  ;;  %3815 = vmatpush1.bf16.msra.mxu1 %v4683_v18  ;;  %v854_v17 = vld [vmem:[#allocation8 + $0xd60] sm:$0xff]  ;;  %v851_v18 = vld [vmem:[#allocation8 + $0xd48] sm:$0xff] }
 0x1d0   :  { %3652 = vmatprep.subr.bf16.mxu0 %v4690_v19  ;;  %3816 = vmatprep.subr.bf16.mxu1 %v4692_v20  ;;  %v855_v19 = vld [vmem:[#allocation8 + $0xd68] sm:$0xff]  ;;  %v4729_v20 = vcombine.low %v842_v0, %v846_v2  ;;  %v4738_v22 = vcombine.high %v850_v12, %v854_v17  ;;  %v890_v0 = vld [vmem:[#allocation8 + $0xe80] sm:$0xff] }
 0x1d1   :  { %v4740_v23 = vcombine.high %v851_v18, %v855_v19  ;;  %v894_v2 = vld [vmem:[#allocation8 + $0xea0] sm:$0xff]  ;;  %v895_v6 = vld [vmem:[#allocation8 + $0xea8] sm:$0xff] }
 0x1d3   :  { %3653 = vmatpush1.bf16.msra.mxu0 %v4689_v46  ;;  %3817 = vmatpush1.bf16.msra.mxu1 %v4691_v27  ;;  %v863_v46 = vld [vmem:[#allocation8 + $0xda8] sm:$0xff]  ;;  %v4737_v27 = vcombine.low %v850_v12, %v854_v17  ;;  %v898_v12 = vld [vmem:[#allocation8 + $0xec0] sm:$0xff] }
 0x1d4   :  { %3663 = vmatprep.subr.bf16.mxu0 %v4698_v15  ;;  %3827 = vmatprep.subr.bf16.mxu1 %v4700_v28  ;;  %v4739_v15 = vcombine.low %v851_v18, %v855_v19  ;;  %v4746_v28 = vcombine.high %v858_v24, %v862_v25  ;;  %v4748_v29 = vcombine.high %v859_v26, %v863_v46  ;;  %v902_v17 = vld [vmem:[#allocation8 + $0xee0] sm:$0xff]  ;;  %v899_v18 = vld [vmem:[#allocation8 + $0xec8] sm:$0xff] }
 0x1d5   :  { %v903_v19 = vld [vmem:[#allocation8 + $0xee8] sm:$0xff] }
 0x1d6   :  { %3655 = vmatmul.mubr.bf16.vlgmr.msra.gmra.mrb[8].mxu0 %v5239_v34  ;;  %3819 = vmatmul.mubr.bf16.vlgmr.msra.gmra.mrb[8].mxu1 %v5239_v34 }
 0x1d7   :  { %3664 = vmatpush1.bf16.msra.mxu0 %v4697_v35  ;;  %3828 = vmatpush1.bf16.msra.mxu1 %v4699_v4  ;;  %v4745_v35 = vcombine.low %v858_v24, %v862_v25  ;;  %v4747_v4 = vcombine.low %v859_v26, %v863_v46  ;;  %v906_v24 = vld [vmem:[#allocation8 + $0xf00] sm:$0xff]  ;;  %v907_v26 = vld [vmem:[#allocation8 + $0xf08] sm:$0xff] }
 0x1d8   :  { %3665 = vmatprep.subr.bf16.mxu0 %v4706_v36  ;;  %3829 = vmatprep.subr.bf16.mxu1 %v4708_v37  ;;  %v4754_v36 = vcombine.high %v866_v30, %v870_v31  ;;  %v4756_v37 = vcombine.high %v867_v32, %v871_v33  ;;  %v910_v25 = vld [vmem:[#allocation8 + $0xf20] sm:$0xff]  ;;  %v911_v46 = vld [vmem:[#allocation8 + $0xf28] sm:$0xff] }
 0x1d9   :  { %3695 = vmatprep.mubr.bf16.mxu0 %v5241_v41  ;;  %3859 = vmatprep.mubr.bf16.mxu1 %v5241_v41 }
 0x1db   :  { %3666 = vmatpush1.bf16.msra.mxu0 %v4705_v42  ;;  %3830 = vmatpush1.bf16.msra.mxu1 %v4707_v43  ;;  %v4753_v42 = vcombine.low %v866_v30, %v870_v31  ;;  %v4755_v43 = vcombine.low %v867_v32, %v871_v33  ;;  %v914_v30 = vld [vmem:[#allocation8 + $0xf40] sm:$0xff]  ;;  %v915_v32 = vld [vmem:[#allocation8 + $0xf48] sm:$0xff] }
 0x1dc   :  { %3667 = vmatprep.subr.bf16.mxu0 %v4714_v50  ;;  %3831 = vmatprep.subr.bf16.mxu1 %v4716_v52  ;;  %v4762_v50 = vcombine.high %v874_v38, %v878_v39  ;;  %v4764_v52 = vcombine.high %v875_v57, %v879_v40  ;;  %v918_v31 = vld [vmem:[#allocation8 + $0xf60] sm:$0xff]  ;;  %v919_v33 = vld [vmem:[#allocation8 + $0xf68] sm:$0xff] }
 0x1df   :  { %3668 = vmatpush1.bf16.msra.mxu0 %v4713_v56  ;;  %3832 = vmatpush1.bf16.msra.mxu1 %v4715_v58  ;;  %v4761_v56 = vcombine.low %v874_v38, %v878_v39  ;;  %v4763_v58 = vcombine.low %v875_v57, %v879_v40  ;;  %v4804_v38 = vcombine.high %v915_v32, %v919_v33  ;;  %v922_v39 = vld [vmem:[#allocation8 + $0xf80] sm:$0xff]  ;;  %v923_v40 = vld [vmem:[#allocation8 + $0xf88] sm:$0xff] }
 0x1e0   :  { %3669 = vmatprep.subr.bf16.mxu0 %v4722_v61  ;;  %3833 = vmatprep.subr.bf16.mxu1 %v4724_v63  ;;  %v4770_v61 = vcombine.high %v882_v16, %v886_v53  ;;  %v4772_v63 = vcombine.high %v883_v54, %v887_v55  ;;  %v926_v57 = vld [vmem:[#allocation8 + $0xfa0] sm:$0xff] }
 0x1e3   :  { %3670 = vmatpush1.bf16.msra.mxu0 %v4721_v8  ;;  %3834 = vmatpush1.bf16.msra.mxu1 %v4723_v9  ;;  %v4769_v8 = vcombine.low %v882_v16, %v886_v53  ;;  %v4771_v9 = vcombine.low %v883_v54, %v887_v55  ;;  %v4810_v53 = vcombine.high %v922_v39, %v926_v57  ;;  %v930_v54 = vld [vmem:[#allocation8 + $0xfc0] sm:$0xff] }
 0x1e4   :  { %3671 = vmatprep.subr.bf16.mxu0 %v4730_v10  ;;  %3835 = vmatprep.subr.bf16.mxu1 %v4732_v11  ;;  %v4778_v10 = vcombine.high %v890_v0, %v894_v2  ;;  %v4780_v11 = vcombine.high %v891_v3, %v895_v6  ;;  %v934_v55 = vld [vmem:[#allocation8 + $0xfe0] sm:$0xff] }
 0x1e7   :  { %3672 = vmatpush1.bf16.msra.mxu0 %v4729_v20  ;;  %3836 = vmatpush1.bf16.msra.mxu1 %v4731_v21  ;;  %v4777_v20 = vcombine.low %v890_v0, %v894_v2  ;;  %v4779_v21 = vcombine.low %v891_v3, %v895_v6  ;;  %v4818_v2 = vcombine.high %v930_v54, %v934_v55  ;;  %v428_v6 = vld [vmem:[#allocation8 + $0x10] sm:$0xff] }
 0x1e8   :  { %3673 = vmatprep.subr.bf16.mxu0 %v4738_v22  ;;  %3837 = vmatprep.subr.bf16.mxu1 %v4740_v23  ;;  %v4786_v22 = vcombine.high %v898_v12, %v902_v17  ;;  %v4788_v23 = vcombine.high %v899_v18, %v903_v19 }
 0x1eb   :  { %3674 = vmatpush1.bf16.msra.mxu0 %v4737_v27  ;;  %3838 = vmatpush1.bf16.msra.mxu1 %v4739_v15  ;;  %v4785_v27 = vcombine.low %v898_v12, %v902_v17  ;;  %v4787_v15 = vcombine.low %v899_v18, %v903_v19 }
 0x1ec   :  { %3675 = vmatprep.subr.bf16.mxu0 %v4746_v28  ;;  %3839 = vmatprep.subr.bf16.mxu1 %v4748_v29  ;;  %v4794_v28 = vcombine.high %v906_v24, %v910_v25  ;;  %v4796_v29 = vcombine.high %v907_v26, %v911_v46 }
 0x1ef   :  { %3676 = vmatpush1.bf16.msra.mxu0 %v4745_v35  ;;  %3840 = vmatpush1.bf16.msra.mxu1 %v4747_v4  ;;  %v4793_v35 = vcombine.low %v906_v24, %v910_v25  ;;  %v4795_v4 = vcombine.low %v907_v26, %v911_v46 }
 0x1f0   :  { %3677 = vmatprep.subr.bf16.mxu0 %v4754_v36  ;;  %3841 = vmatprep.subr.bf16.mxu1 %v4756_v37  ;;  %v5248_v36 = vsub.s32 6, %v5166_v44  ;;  %v4802_v37 = vcombine.high %v914_v30, %v918_v31 }
 0x1f3   :  { %3678 = vmatpush1.bf16.msra.mxu0 %v4753_v42  ;;  %3842 = vmatpush1.bf16.msra.mxu1 %v4755_v43  ;;  %v927_v42 = vld [vmem:[#allocation8 + $0xfa8] sm:$0xff]  ;;  %v4801_v43 = vcombine.low %v914_v30, %v918_v31 }
 0x1f4   :  { %3679 = vmatprep.subr.bf16.mxu0 %v4762_v50  ;;  %3843 = vmatprep.subr.bf16.mxu1 %v4764_v52  ;;  %v4803_v50 = vcombine.low %v915_v32, %v919_v33  ;;  %v4897_v52 = vld [vmem:[#allocation7] sm:$0xff]  ;;  %v4812_v44 = vcombine.high %v923_v40, %v927_v42 }
 0x1f5   :  { %v149_v16 = vrot.slane %v4897_v52, %v5248_v36  ;;  %v465_v52 = vld [vmem:[#allocation8 + $0x138] sm:$0xff] }
 0x1f7   :  { %3680 = vmatpush1.bf16.msra.mxu0 %v4761_v56  ;;  %3844 = vmatpush1.bf16.msra.mxu1 %v4763_v58  ;;  %v931_v56 = vld [vmem:[#allocation8 + $0xfc8] sm:$0xff]  ;;  %v404_v0 = vadd.f32 %v5203_v62, %v149_v16  ;;  %v437_v62 = vld [vmem:[#allocation8 + $0x58] sm:$0xff] }
 0x1f8   :  { %3681 = vmatprep.subr.bf16.mxu0 %v4770_v61  ;;  %3845 = vmatprep.subr.bf16.mxu1 %v4772_v63  ;;  %v935_v58 = vld [vmem:[#allocation8 + $0xfe8] sm:$0xff]  ;;  %v4809_v61 = vcombine.low %v922_v39, %v926_v57  ;;  %v4811_v63 = vcombine.low %v923_v40, %v927_v42 }
 0x1f9   :  { %v4820_v3 = vcombine.high %v931_v56, %v935_v58  ;;  %v4819_v12 = vcombine.low %v931_v56, %v935_v58  ;;  %v416_v17 = vmax.f32 %v404_v0, 0.0  ;;  %v472_v56 = vld [vmem:[#allocation8 + $0x170] sm:$0xff]  ;;  %v469_v58 = vld [vmem:[#allocation8 + $0x158] sm:$0xff] }
 0x1fb   :  { %3682 = vmatpush1.bf16.msra.mxu0 %v4769_v8  ;;  %3846 = vmatpush1.bf16.msra.mxu1 %v4771_v9  ;;  %v432_v8 = vld [vmem:[#allocation8 + $0x30] sm:$0xff]  ;;  %v429_v9 = vld [vmem:[#allocation8 + $0x18] sm:$0xff]  ;;  %v5252_v24 = vpack.c.bf16 %v416_v17, %v416_v17 }
 0x1fc   :  { %3683 = vmatprep.subr.bf16.mxu0 %v4778_v10  ;;  %3847 = vmatprep.subr.bf16.mxu1 %v4780_v11  ;;  %v433_v10 = vld [vmem:[#allocation8 + $0x38] sm:$0xff]  ;;  %v4817_v11 = vcombine.low %v930_v54, %v934_v55  ;;  %v4318_v18 = vcombine.high %v428_v6, %v432_v8  ;;  %v468_v55 = vld [vmem:[#allocation8 + $0x150] sm:$0xff] }
 0x1fd   :  { %v4320_v19 = vcombine.high %v429_v9, %v433_v10  ;;  %v4319_v25 = vcombine.low %v429_v9, %v433_v10  ;;  %v477_v9 = vld [vmem:[#allocation8 + $0x198] sm:$0xff] }
 0x1fe   :  { %v481_v10 = vld [vmem:[#allocation8 + $0x1b8] sm:$0xff] }
 0x1ff   :  { %3684 = vmatpush1.bf16.msra.mxu0 %v4777_v20  ;;  %3848 = vmatpush1.bf16.msra.mxu1 %v4779_v21  ;;  %v436_v20 = vld [vmem:[#allocation8 + $0x50] sm:$0xff] }
 0x200   :  { %3685 = vmatprep.subr.bf16.mxu0 %v4786_v22  ;;  %3849 = vmatprep.subr.bf16.mxu1 %v4788_v23  ;;  %v440_v21 = vld [vmem:[#allocation8 + $0x70] sm:$0xff]  ;;  %v441_v22 = vld [vmem:[#allocation8 + $0x78] sm:$0xff]  ;;  %v4317_v23 = vcombine.low %v428_v6, %v432_v8 }
 0x201   :  { %v4326_v26 = vcombine.high %v436_v20, %v440_v21  ;;  %v4328_v46 = vcombine.high %v437_v62, %v441_v22  ;;  %v4325_v30 = vcombine.low %v436_v20, %v440_v21  ;;  %v4327_v31 = vcombine.low %v437_v62, %v441_v22  ;;  %v476_v6 = vld [vmem:[#allocation8 + $0x190] sm:$0xff]  ;;  %v485_v21 = vld [vmem:[#allocation8 + $0x1d8] sm:$0xff] }
 0x202   :  { %v480_v8 = vld [vmem:[#allocation8 + $0x1b0] sm:$0xff]  ;;  %v489_v62 = vld [vmem:[#allocation8 + $0x1f8] sm:$0xff] }
 0x203   :  { %3686 = vmatpush1.bf16.msra.mxu0 %v4785_v27  ;;  %3850 = vmatpush1.bf16.msra.mxu1 %v4787_v15  ;;  %v444_v27 = vld [vmem:[#allocation8 + $0x90] sm:$0xff]  ;;  %v4366_v17 = vcombine.high %v476_v6, %v480_v8  ;;  %v4365_v22 = vcombine.low %v476_v6, %v480_v8  ;;  %v525_v8 = vld [vmem:[#allocation8 + $0x318] sm:$0xff] }
 0x204   :  { %3687 = vmatprep.subr.bf16.mxu0 %v4794_v28  ;;  %3851 = vmatprep.subr.bf16.mxu1 %v4796_v29  ;;  %v448_v15 = vld [vmem:[#allocation8 + $0xb0] sm:$0xff]  ;;  %v445_v28 = vld [vmem:[#allocation8 + $0x98] sm:$0xff] }
 0x205   :  { %v449_v29 = vld [vmem:[#allocation8 + $0xb8] sm:$0xff]  ;;  %v4334_v32 = vcombine.high %v444_v27, %v448_v15  ;;  %v4333_v39 = vcombine.low %v444_v27, %v448_v15  ;;  %v488_v20 = vld [vmem:[#allocation8 + $0x1f0] sm:$0xff] }
 0x206   :  { %v4336_v33 = vcombine.high %v445_v28, %v449_v29  ;;  %v4335_v57 = vcombine.low %v445_v28, %v449_v29  ;;  %v496_v27 = vld [vmem:[#allocation8 + $0x230] sm:$0xff]  ;;  %v493_v15 = vld [vmem:[#allocation8 + $0x218] sm:$0xff] }
 0x207   :  { %3688 = vmatpush1.bf16.msra.mxu0 %v4793_v35  ;;  %3852 = vmatpush1.bf16.msra.mxu1 %v4795_v4  ;;  %v452_v35 = vld [vmem:[#allocation8 + $0xd0] sm:$0xff]  ;;  %v497_v28 = vld [vmem:[#allocation8 + $0x238] sm:$0xff] }
 0x208   :  { %3689 = vmatprep.subr.bf16.mxu0 %v4802_v37  ;;  %3853 = vmatprep.subr.bf16.mxu1 %v4804_v38  ;;  %v456_v4 = vld [vmem:[#allocation8 + $0xf0] sm:$0xff]  ;;  %v453_v37 = vld [vmem:[#allocation8 + $0xd8] sm:$0xff] }
 0x209   :  { %v457_v38 = vld [vmem:[#allocation8 + $0xf8] sm:$0xff]  ;;  %v4342_v40 = vcombine.high %v452_v35, %v456_v4  ;;  %v4341_v16 = vcombine.low %v452_v35, %v456_v4  ;;  %v504_v35 = vld [vmem:[#allocation8 + $0x270] sm:$0xff] }
 0x20a   :  { %v4344_v42 = vcombine.high %v453_v37, %v457_v38  ;;  %v501_v4 = vld [vmem:[#allocation8 + $0x258] sm:$0xff]  ;;  %v528_v6 = vld [vmem:[#allocation8 + $0x330] sm:$0xff] }
 0x20b   :  { %3690 = vmatpush1.bf16.msra.mxu0 %v4801_v43  ;;  %3854 = vmatpush1.bf16.msra.mxu1 %v4803_v50  ;;  %v460_v43 = vld [vmem:[#allocation8 + $0x110] sm:$0xff] }
 0x20c   :  { %3691 = vmatprep.subr.bf16.mxu0 %v4810_v53  ;;  %3855 = vmatprep.subr.bf16.mxu1 %v4812_v44  ;;  %v464_v50 = vld [vmem:[#allocation8 + $0x130] sm:$0xff]  ;;  %v4343_v53 = vcombine.low %v453_v37, %v457_v38  ;;  %v505_v37 = vld [vmem:[#allocation8 + $0x278] sm:$0xff] }
 0x20d   :  { %v4350_v44 = vcombine.high %v460_v43, %v464_v50 }
 0x20f   :  { %3692 = vmatpush1.bf16.msra.mxu0 %v4809_v61  ;;  %3856 = vmatpush1.bf16.msra.mxu1 %v4811_v63  ;;  %v473_v61 = vld [vmem:[#allocation8 + $0x178] sm:$0xff]  ;;  %v4349_v63 = vcombine.low %v460_v43, %v464_v50  ;;  %v512_v43 = vld [vmem:[#allocation8 + $0x2b0] sm:$0xff] }
 0x210   :  { %3693 = vmatprep.subr.bf16.mxu0 %v4818_v2  ;;  %3857 = vmatprep.subr.bf16.mxu1 %v4820_v3  ;;  %v4358_v2 = vcombine.high %v468_v55, %v472_v56  ;;  %v4360_v3 = vcombine.high %v469_v58, %v473_v61  ;;  %v509_v50 = vld [vmem:[#allocation8 + $0x298] sm:$0xff] }
 0x213   :  { %3694 = vmatpush1.bf16.msra.mxu0 %v4817_v11  ;;  %3858 = vmatpush1.bf16.msra.mxu1 %v4819_v12  ;;  %v4357_v11 = vcombine.low %v468_v55, %v472_v56  ;;  %v4359_v12 = vcombine.low %v469_v58, %v473_v61  ;;  %v520_v55 = vld [vmem:[#allocation8 + $0x2f0] sm:$0xff]  ;;  %v517_v56 = vld [vmem:[#allocation8 + $0x2d8] sm:$0xff] }
 0x214   :  { %3868 = vmatprep.subr.bf16.mxu0 %v4318_v18  ;;  %4032 = vmatprep.subr.bf16.mxu1 %v4320_v19  ;;  %v4368_v18 = vcombine.high %v477_v9, %v481_v10  ;;  %v484_v19 = vld [vmem:[#allocation8 + $0x1d0] sm:$0xff]  ;;  %v521_v58 = vld [vmem:[#allocation8 + $0x2f8] sm:$0xff] }
 0x215   :  { %v4373_v29 = vcombine.low %v484_v19, %v488_v20 }
 0x216   :  { %3696 = vmatmul.mubr.bf16.vlgmr.msra.gmra.mrb[8].mxu0 %v5252_v24  ;;  %3860 = vmatmul.mubr.bf16.vlgmr.msra.gmra.mrb[8].mxu1 %v5252_v24 }
 0x217   :  { %3869 = vmatpush1.bf16.msra.mxu0 %v4317_v23  ;;  %3900 = vmatprep.mubr.bf16.mxu0 %v5187_v5  ;;  %v4367_v23 = vcombine.low %v477_v9, %v481_v10  ;;  %v529_v9 = vld [vmem:[#allocation8 + $0x338] sm:$0xff] }
 0x218   :  { %4033 = vmatpush1.bf16.msra.mxu1 %v4319_v25  ;;  %4064 = vmatprep.mubr.bf16.mxu1 %v5187_v5  ;;  %v461_v5 = vld [vmem:[#allocation8 + $0x118] sm:$0xff]  ;;  %v4374_v25 = vcombine.high %v484_v19, %v488_v20  ;;  %v536_v19 = vld [vmem:[#allocation8 + $0x370] sm:$0xff] }
 0x219   :  { %3870 = vmatprep.subr.bf16.mxu0 %v4326_v26  ;;  %4034 = vmatprep.subr.bf16.mxu1 %v4328_v46  ;;  %v4352_v54 = vcombine.high %v461_v5, %v465_v52  ;;  %v4351_v0 = vcombine.low %v461_v5, %v465_v52  ;;  %v4376_v26 = vcombine.high %v485_v21, %v489_v62  ;;  %v492_v46 = vld [vmem:[#allocation8 + $0x210] sm:$0xff]  ;;  %v513_v5 = vld [vmem:[#allocation8 + $0x2b8] sm:$0xff] }
 0x21a   :  { %v4381_v38 = vcombine.low %v492_v46, %v496_v27  ;;  %v533_v20 = vld [vmem:[#allocation8 + $0x358] sm:$0xff] }
 0x21b   :  { %3871 = vmatpush1.bf16.msra.mxu0 %v4325_v30  ;;  %v4375_v30 = vcombine.low %v485_v21, %v489_v62  ;;  %v537_v21 = vld [vmem:[#allocation8 + $0x378] sm:$0xff] }
 0x21c   :  { %4035 = vmatpush1.bf16.msra.mxu1 %v4327_v31  ;;  %3872 = vmatprep.subr.bf16.mxu0 %v4334_v32  ;;  %v4382_v31 = vcombine.high %v492_v46, %v496_v27  ;;  %v4384_v32 = vcombine.high %v493_v15, %v497_v28  ;;  %v544_v46 = vld [vmem:[#allocation8 + $0x3b0] sm:$0xff]  ;;  %v541_v27 = vld [vmem:[#allocation8 + $0x398] sm:$0xff] }
 0x21d   :  { %4036 = vmatprep.subr.bf16.mxu1 %v4336_v33  ;;  %v500_v33 = vld [vmem:[#allocation8 + $0x250] sm:$0xff] }
 0x21e   :  { %v4389_v52 = vcombine.low %v500_v33, %v504_v35 }
 0x21f   :  { %3873 = vmatpush1.bf16.msra.mxu0 %v4333_v39  ;;  %v4383_v39 = vcombine.low %v493_v15, %v497_v28  ;;  %v545_v15 = vld [vmem:[#allocation8 + $0x3b8] sm:$0xff] }
 0x220   :  { %4037 = vmatpush1.bf16.msra.mxu1 %v4335_v57  ;;  %3874 = vmatprep.subr.bf16.mxu0 %v4342_v40  ;;  %v4390_v57 = vcombine.high %v500_v33, %v504_v35  ;;  %v4392_v40 = vcombine.high %v501_v4, %v505_v37  ;;  %v552_v33 = vld [vmem:[#allocation8 + $0x3f0] sm:$0xff]  ;;  %v549_v35 = vld [vmem:[#allocation8 + $0x3d8] sm:$0xff] }
 0x221   :  { %4038 = vmatprep.subr.bf16.mxu1 %v4344_v42  ;;  %v508_v42 = vld [vmem:[#allocation8 + $0x290] sm:$0xff] }
 0x222   :  { %v4397_v61 = vcombine.low %v508_v42, %v512_v43 }
 0x223   :  { %3875 = vmatpush1.bf16.msra.mxu0 %v4341_v16  ;;  %v4391_v16 = vcombine.low %v501_v4, %v505_v37  ;;  %v553_v4 = vld [vmem:[#allocation8 + $0x3f8] sm:$0xff] }
 0x224   :  { %4039 = vmatpush1.bf16.msra.mxu1 %v4343_v53  ;;  %3876 = vmatprep.subr.bf16.mxu0 %v4350_v44  ;;  %v4398_v53 = vcombine.high %v508_v42, %v512_v43  ;;  %v4400_v44 = vcombine.high %v509_v50, %v513_v5  ;;  %v560_v42 = vld [vmem:[#allocation8 + $0x430] sm:$0xff]  ;;  %v557_v43 = vld [vmem:[#allocation8 + $0x418] sm:$0xff] }
 0x225   :  { %4040 = vmatprep.subr.bf16.mxu1 %v4352_v54  ;;  %v516_v54 = vld [vmem:[#allocation8 + $0x2d0] sm:$0xff] }
 0x226   :  { %v4405_v10 = vcombine.low %v516_v54, %v520_v55 }
 0x227   :  { %3877 = vmatpush1.bf16.msra.mxu0 %v4349_v63  ;;  %v4399_v63 = vcombine.low %v509_v50, %v513_v5  ;;  %v561_v50 = vld [vmem:[#allocation8 + $0x438] sm:$0xff] }
 0x228   :  { %4041 = vmatpush1.bf16.msra.mxu1 %v4351_v0  ;;  %3878 = vmatprep.subr.bf16.mxu0 %v4358_v2  ;;  %v4406_v0 = vcombine.high %v516_v54, %v520_v55  ;;  %v4408_v2 = vcombine.high %v517_v56, %v521_v58  ;;  %v568_v54 = vld [vmem:[#allocation8 + $0x470] sm:$0xff] }
 0x229   :  { %4042 = vmatprep.subr.bf16.mxu1 %v4360_v3  ;;  %v524_v3 = vld [vmem:[#allocation8 + $0x310] sm:$0xff] }
 0x22a   :  { %v4413_v62 = vcombine.low %v524_v3, %v528_v6 }
 0x22b   :  { %3879 = vmatpush1.bf16.msra.mxu0 %v4357_v11  ;;  %v4407_v11 = vcombine.low %v517_v56, %v521_v58  ;;  %v565_v56 = vld [vmem:[#allocation8 + $0x458] sm:$0xff] }
 0x22c   :  { %4043 = vmatpush1.bf16.msra.mxu1 %v4359_v12  ;;  %3880 = vmatprep.subr.bf16.mxu0 %v4366_v17  ;;  %v4414_v12 = vcombine.high %v524_v3, %v528_v6  ;;  %v4416_v17 = vcombine.high %v525_v8, %v529_v9  ;;  %v569_v58 = vld [vmem:[#allocation8 + $0x478] sm:$0xff] }
 0x22d   :  { %4044 = vmatprep.subr.bf16.mxu1 %v4368_v18  ;;  %v532_v18 = vld [vmem:[#allocation8 + $0x350] sm:$0xff]  ;;  %v4456_v3 = vcombine.high %v565_v56, %v569_v58  ;;  %v573_v6 = vld [vmem:[#allocation8 + $0x498] sm:$0xff] }
 0x22e   :  { %v4421_v28 = vcombine.low %v532_v18, %v536_v19 }
 0x22f   :  { %3881 = vmatpush1.bf16.msra.mxu0 %v4365_v22  ;;  %v4415_v22 = vcombine.low %v525_v8, %v529_v9  ;;  %v577_v8 = vld [vmem:[#allocation8 + $0x4b8] sm:$0xff] }
 0x230   :  { %4045 = vmatpush1.bf16.msra.mxu1 %v4367_v23  ;;  %3882 = vmatprep.subr.bf16.mxu0 %v4374_v25  ;;  %v4422_v23 = vcombine.high %v532_v18, %v536_v19  ;;  %v4424_v25 = vcombine.high %v533_v20, %v537_v21  ;;  %v584_v18 = vld [vmem:[#allocation8 + $0x4f0] sm:$0xff]  ;;  %v581_v19 = vld [vmem:[#allocation8 + $0x4d8] sm:$0xff] }
 0x231   :  { %4046 = vmatprep.subr.bf16.mxu1 %v4376_v26  ;;  %v540_v26 = vld [vmem:[#allocation8 + $0x390] sm:$0xff] }
 0x232   :  { %v4429_v37 = vcombine.low %v540_v26, %v544_v46 }
 0x233   :  { %3883 = vmatpush1.bf16.msra.mxu0 %v4373_v29  ;;  %v4423_v29 = vcombine.low %v533_v20, %v537_v21  ;;  %v585_v20 = vld [vmem:[#allocation8 + $0x4f8] sm:$0xff] }
 0x234   :  { %4047 = vmatpush1.bf16.msra.mxu1 %v4375_v30  ;;  %3884 = vmatprep.subr.bf16.mxu0 %v4382_v31  ;;  %v4430_v30 = vcombine.high %v540_v26, %v544_v46  ;;  %v4432_v31 = vcombine.high %v541_v27, %v545_v15  ;;  %v589_v26 = vld [vmem:[#allocation8 + $0x518] sm:$0xff] }
 0x235   :  { %4048 = vmatprep.subr.bf16.mxu1 %v4384_v32  ;;  %v548_v32 = vld [vmem:[#allocation8 + $0x3d0] sm:$0xff]  ;;  %v593_v46 = vld [vmem:[#allocation8 + $0x538] sm:$0xff] }
 0x236   :  { %v4437_v5 = vcombine.low %v548_v32, %v552_v33 }
 0x237   :  { %3885 = vmatpush1.bf16.msra.mxu0 %v4381_v38  ;;  %v4431_v38 = vcombine.low %v541_v27, %v545_v15  ;;  %v4471_v27 = vcombine.low %v581_v19, %v585_v20 }
 0x238   :  { %4049 = vmatpush1.bf16.msra.mxu1 %v4383_v39  ;;  %3886 = vmatprep.subr.bf16.mxu0 %v4390_v57  ;;  %v4438_v39 = vcombine.high %v548_v32, %v552_v33  ;;  %v4440_v57 = vcombine.high %v549_v35, %v553_v4  ;;  %v601_v32 = vld [vmem:[#allocation8 + $0x578] sm:$0xff] }
 0x239   :  { %4050 = vmatprep.subr.bf16.mxu1 %v4392_v40  ;;  %v556_v40 = vld [vmem:[#allocation8 + $0x410] sm:$0xff] }
 0x23a   :  { %v4445_v55 = vcombine.low %v556_v40, %v560_v42 }
 0x23b   :  { %3887 = vmatpush1.bf16.msra.mxu0 %v4389_v52  ;;  %v4439_v52 = vcombine.low %v549_v35, %v553_v4  ;;  %v4479_v35 = vcombine.low %v589_v26, %v593_v46 }
 0x23c   :  { %4051 = vmatpush1.bf16.msra.mxu1 %v4391_v16  ;;  %3888 = vmatprep.subr.bf16.mxu0 %v4398_v53  ;;  %v4446_v16 = vcombine.high %v556_v40, %v560_v42  ;;  %v4448_v53 = vcombine.high %v557_v43, %v561_v50  ;;  %v609_v40 = vld [vmem:[#allocation8 + $0x5b8] sm:$0xff] }
 0x23d   :  { %4052 = vmatprep.subr.bf16.mxu1 %v4400_v44  ;;  %v564_v44 = vld [vmem:[#allocation8 + $0x450] sm:$0xff] }
 0x23e   :  { %v4453_v9 = vcombine.low %v564_v44, %v568_v54 }
 0x23f   :  { %3889 = vmatpush1.bf16.msra.mxu0 %v4397_v61  ;;  %v4447_v61 = vcombine.low %v557_v43, %v561_v50 }
 0x240   :  { %4053 = vmatpush1.bf16.msra.mxu1 %v4399_v63  ;;  %3890 = vmatprep.subr.bf16.mxu0 %v4406_v0  ;;  %v4454_v63 = vcombine.high %v564_v44, %v568_v54  ;;  %v572_v0 = vld [vmem:[#allocation8 + $0x490] sm:$0xff]  ;;  %v617_v44 = vld [vmem:[#allocation8 + $0x5f8] sm:$0xff] }
 0x241   :  { %4054 = vmatprep.subr.bf16.mxu1 %v4408_v2  ;;  %v576_v2 = vld [vmem:[#allocation8 + $0x4b0] sm:$0xff] }
 0x242   :  { %v4461_v21 = vcombine.low %v572_v0, %v576_v2 }
 0x243   :  { %3891 = vmatpush1.bf16.msra.mxu0 %v4405_v10  ;;  %v4455_v10 = vcombine.low %v565_v56, %v569_v58 }
 0x244   :  { %4055 = vmatpush1.bf16.msra.mxu1 %v4407_v11  ;;  %3892 = vmatprep.subr.bf16.mxu0 %v4414_v12  ;;  %v4462_v11 = vcombine.high %v572_v0, %v576_v2  ;;  %v4464_v12 = vcombine.high %v573_v6, %v577_v8  ;;  %v621_v0 = vld [vmem:[#allocation8 + $0x618] sm:$0xff] }
 0x245   :  { %4056 = vmatprep.subr.bf16.mxu1 %v4416_v17  ;;  %v580_v17 = vld [vmem:[#allocation8 + $0x4d0] sm:$0xff]  ;;  %v625_v2 = vld [vmem:[#allocation8 + $0x638] sm:$0xff] }
 0x247   :  { %3893 = vmatpush1.bf16.msra.mxu0 %v4413_v62  ;;  %v4470_v62 = vcombine.high %v580_v17, %v584_v18 }
 0x248   :  { %4057 = vmatpush1.bf16.msra.mxu1 %v4415_v22  ;;  %3894 = vmatprep.subr.bf16.mxu0 %v4422_v23  ;;  %v4472_v22 = vcombine.high %v581_v19, %v585_v20  ;;  %v588_v23 = vld [vmem:[#allocation8 + $0x510] sm:$0xff]  ;;  %v4511_v19 = vcombine.low %v621_v0, %v625_v2 }
 0x249   :  { %4058 = vmatprep.subr.bf16.mxu1 %v4424_v25  ;;  %v592_v25 = vld [vmem:[#allocation8 + $0x530] sm:$0xff] }
 0x24a   :  { %v4478_v15 = vcombine.high %v588_v23, %v592_v25  ;;  %v4477_v33 = vcombine.low %v588_v23, %v592_v25  ;;  %v641_v23 = vld [vmem:[#allocation8 + $0x6b8] sm:$0xff] }
 0x24b   :  { %3895 = vmatpush1.bf16.msra.mxu0 %v4421_v28  ;;  %v4480_v28 = vcombine.high %v589_v26, %v593_v46 }
 0x24c   :  { %4059 = vmatpush1.bf16.msra.mxu1 %v4423_v29  ;;  %3896 = vmatprep.subr.bf16.mxu0 %v4430_v30  ;;  %v596_v29 = vld [vmem:[#allocation8 + $0x550] sm:$0xff] }
 0x24d   :  { %4060 = vmatprep.subr.bf16.mxu1 %v4432_v31  ;;  %v600_v30 = vld [vmem:[#allocation8 + $0x570] sm:$0xff]  ;;  %v597_v31 = vld [vmem:[#allocation8 + $0x558] sm:$0xff] }
 0x24e   :  { %v4486_v4 = vcombine.high %v596_v29, %v600_v30  ;;  %v4485_v42 = vcombine.low %v596_v29, %v600_v30  ;;  %v4487_v43 = vcombine.low %v597_v31, %v601_v32  ;;  %v649_v29 = vld [vmem:[#allocation8 + $0x6f8] sm:$0xff] }
 0x24f   :  { %3897 = vmatpush1.bf16.msra.mxu0 %v4429_v37  ;;  %v4488_v37 = vcombine.high %v597_v31, %v601_v32 }
 0x250   :  { %4061 = vmatpush1.bf16.msra.mxu1 %v4431_v38  ;;  %3898 = vmatprep.subr.bf16.mxu0 %v4438_v39  ;;  %v604_v38 = vld [vmem:[#allocation8 + $0x590] sm:$0xff] }
 0x251   :  { %4062 = vmatprep.subr.bf16.mxu1 %v4440_v57  ;;  %v608_v39 = vld [vmem:[#allocation8 + $0x5b0] sm:$0xff]  ;;  %v605_v57 = vld [vmem:[#allocation8 + $0x598] sm:$0xff] }
 0x252   :  { %v4494_v50 = vcombine.high %v604_v38, %v608_v39  ;;  %v4493_v54 = vcombine.low %v604_v38, %v608_v39  ;;  %v657_v38 = vld [vmem:[#allocation8 + $0x738] sm:$0xff] }
 0x253   :  { %3899 = vmatpush1.bf16.msra.mxu0 %v4437_v5  ;;  %v4496_v5 = vcombine.high %v605_v57, %v609_v40 }
 0x254   :  { %4063 = vmatpush1.bf16.msra.mxu1 %v4439_v52  ;;  %3909 = vmatprep.subr.bf16.mxu0 %v4446_v16  ;;  %v612_v52 = vld [vmem:[#allocation8 + $0x5d0] sm:$0xff] }
 0x255   :  { %4073 = vmatprep.subr.bf16.mxu1 %v4448_v53  ;;  %v616_v16 = vld [vmem:[#allocation8 + $0x5f0] sm:$0xff]  ;;  %v613_v53 = vld [vmem:[#allocation8 + $0x5d8] sm:$0xff] }
 0x256   :  { %3901 = vmatmul.mubr.bf16.vlgmr.msra.gmra.mrb[12].mxu0 %v5189_v7  ;;  %v4502_v56 = vcombine.high %v612_v52, %v616_v16  ;;  %v4504_v58 = vcombine.high %v613_v53, %v617_v44 }
 0x257   :  { %4065 = vmatmul.mubr.bf16.vlgmr.msra.gmra.mrb[12].mxu1 %v5189_v7  ;;  %3910 = vmatpush1.bf16.msra.mxu0 %v4445_v55  ;;  %v4463_v7 = vcombine.low %v573_v6, %v577_v8  ;;  %v4495_v55 = vcombine.low %v605_v57, %v609_v40  ;;  %v4503_v6 = vcombine.low %v613_v53, %v617_v44 }
 0x258   :  { %3941 = vmatprep.mubr.bf16.mxu0 %v5193_v14  ;;  %4074 = vmatpush1.bf16.msra.mxu1 %v4447_v61  ;;  %v620_v61 = vld [vmem:[#allocation8 + $0x610] sm:$0xff] }
 0x259   :  { %4105 = vmatprep.mubr.bf16.mxu1 %v5193_v14  ;;  %3911 = vmatprep.subr.bf16.mxu0 %v4454_v63  ;;  %v4469_v14 = vcombine.low %v580_v17, %v584_v18  ;;  %v624_v63 = vld [vmem:[#allocation8 + $0x630] sm:$0xff]  ;;  %v633_v17 = vld [vmem:[#allocation8 + $0x678] sm:$0xff] }
 0x25a   :  { %4075 = vmatprep.subr.bf16.mxu1 %v4456_v3  ;;  %v4501_v3 = vcombine.low %v612_v52, %v616_v16  ;;  %v4510_v8 = vcombine.high %v620_v61, %v624_v63  ;;  %v4509_v18 = vcombine.low %v620_v61, %v624_v63  ;;  %v665_v52 = vld [vmem:[#allocation8 + $0x778] sm:$0xff] }
 0x25b   :  { %3912 = vmatpush1.bf16.msra.mxu0 %v4453_v9  ;;  %v4512_v9 = vcombine.high %v621_v0, %v625_v2  ;;  %v673_v61 = vld [vmem:[#allocation8 + $0x7b8] sm:$0xff] }
 0x25c   :  { %4076 = vmatpush1.bf16.msra.mxu1 %v4455_v10  ;;  %3913 = vmatprep.subr.bf16.mxu0 %v4462_v11  ;;  %v628_v10 = vld [vmem:[#allocation8 + $0x650] sm:$0xff] }
 0x25d   :  { %4077 = vmatprep.subr.bf16.mxu1 %v4464_v12  ;;  %v632_v11 = vld [vmem:[#allocation8 + $0x670] sm:$0xff]  ;;  %v629_v12 = vld [vmem:[#allocation8 + $0x658] sm:$0xff] }
 0x25e   :  { %v4518_v20 = vcombine.high %v628_v10, %v632_v11  ;;  %v4517_v25 = vcombine.low %v628_v10, %v632_v11  ;;  %v4519_v26 = vcombine.low %v629_v12, %v633_v17  ;;  %v681_v10 = vld [vmem:[#allocation8 + $0x7f8] sm:$0xff] }
 0x25f   :  { %3914 = vmatpush1.bf16.msra.mxu0 %v4461_v21  ;;  %v4520_v21 = vcombine.high %v629_v12, %v633_v17 }
 0x260   :  { %4078 = vmatpush1.bf16.msra.mxu1 %v4463_v7  ;;  %3915 = vmatprep.subr.bf16.mxu0 %v4470_v62  ;;  %v636_v7 = vld [vmem:[#allocation8 + $0x690] sm:$0xff] }
 0x261   :  { %4079 = vmatprep.subr.bf16.mxu1 %v4472_v22  ;;  %v640_v62 = vld [vmem:[#allocation8 + $0x6b0] sm:$0xff]  ;;  %v637_v22 = vld [vmem:[#allocation8 + $0x698] sm:$0xff] }
 0x262   :  { %v4526_v46 = vcombine.high %v636_v7, %v640_v62  ;;  %v4525_v30 = vcombine.low %v636_v7, %v640_v62  ;;  %v4527_v31 = vcombine.low %v637_v22, %v641_v23  ;;  %v689_v7 = vld [vmem:[#allocation8 + $0x838] sm:$0xff] }
 0x263   :  { %3916 = vmatpush1.bf16.msra.mxu0 %v4469_v14  ;;  %v4528_v14 = vcombine.high %v637_v22, %v641_v23 }
 0x264   :  { %4080 = vmatpush1.bf16.msra.mxu1 %v4471_v27  ;;  %3917 = vmatprep.subr.bf16.mxu0 %v4478_v15  ;;  %v644_v27 = vld [vmem:[#allocation8 + $0x6d0] sm:$0xff] }
 0x265   :  { %4081 = vmatprep.subr.bf16.mxu1 %v4480_v28  ;;  %v648_v15 = vld [vmem:[#allocation8 + $0x6f0] sm:$0xff]  ;;  %v645_v28 = vld [vmem:[#allocation8 + $0x6d8] sm:$0xff] }
 0x266   :  { %v4534_v32 = vcombine.high %v644_v27, %v648_v15  ;;  %v4533_v39 = vcombine.low %v644_v27, %v648_v15  ;;  %v4535_v57 = vcombine.low %v645_v28, %v649_v29  ;;  %v693_v27 = vld [vmem:[#allocation8 + $0x858] sm:$0xff] }
 0x267   :  { %3918 = vmatpush1.bf16.msra.mxu0 %v4477_v33  ;;  %v4536_v33 = vcombine.high %v645_v28, %v649_v29  ;;  %v697_v15 = vld [vmem:[#allocation8 + $0x878] sm:$0xff] }
 0x268   :  { %4082 = vmatpush1.bf16.msra.mxu1 %v4479_v35  ;;  %3919 = vmatprep.subr.bf16.mxu0 %v4486_v4  ;;  %v652_v35 = vld [vmem:[#allocation8 + $0x710] sm:$0xff] }
 0x269   :  { %4083 = vmatprep.subr.bf16.mxu1 %v4488_v37  ;;  %v656_v4 = vld [vmem:[#allocation8 + $0x730] sm:$0xff]  ;;  %v653_v37 = vld [vmem:[#allocation8 + $0x718] sm:$0xff] }
 0x26a   :  { %v4542_v40 = vcombine.high %v652_v35, %v656_v4  ;;  %v4541_v16 = vcombine.low %v652_v35, %v656_v4  ;;  %v4543_v53 = vcombine.low %v653_v37, %v657_v38  ;;  %v705_v35 = vld [vmem:[#allocation8 + $0x8b8] sm:$0xff] }
 0x26b   :  { %3920 = vmatpush1.bf16.msra.mxu0 %v4485_v42  ;;  %v4544_v42 = vcombine.high %v653_v37, %v657_v38  ;;  %v4583_v37 = vcombine.low %v693_v27, %v697_v15 }
 0x26c   :  { %4084 = vmatpush1.bf16.msra.mxu1 %v4487_v43  ;;  %3921 = vmatprep.subr.bf16.mxu0 %v4494_v50  ;;  %v660_v43 = vld [vmem:[#allocation8 + $0x750] sm:$0xff] }
 0x26d   :  { %4085 = vmatprep.subr.bf16.mxu1 %v4496_v5  ;;  %v664_v50 = vld [vmem:[#allocation8 + $0x770] sm:$0xff]  ;;  %v661_v5 = vld [vmem:[#allocation8 + $0x758] sm:$0xff] }
 0x26e   :  { %v4550_v44 = vcombine.high %v660_v43, %v664_v50  ;;  %v4549_v63 = vcombine.low %v660_v43, %v664_v50  ;;  %v4551_v0 = vcombine.low %v661_v5, %v665_v52  ;;  %v713_v43 = vld [vmem:[#allocation8 + $0x8f8] sm:$0xff] }
 0x26f   :  { %3922 = vmatpush1.bf16.msra.mxu0 %v4493_v54  ;;  %v4552_v54 = vcombine.high %v661_v5, %v665_v52 }
 0x270   :  { %4086 = vmatpush1.bf16.msra.mxu1 %v4495_v55  ;;  %3923 = vmatprep.subr.bf16.mxu0 %v4502_v56  ;;  %v668_v55 = vld [vmem:[#allocation8 + $0x790] sm:$0xff] }
 0x271   :  { %4087 = vmatprep.subr.bf16.mxu1 %v4504_v58  ;;  %v672_v56 = vld [vmem:[#allocation8 + $0x7b0] sm:$0xff]  ;;  %v669_v58 = vld [vmem:[#allocation8 + $0x798] sm:$0xff] }
 0x272   :  { %v4558_v2 = vcombine.high %v668_v55, %v672_v56  ;;  %v4557_v11 = vcombine.low %v668_v55, %v672_v56  ;;  %v4559_v12 = vcombine.low %v669_v58, %v673_v61 }
 0x273   :  { %3924 = vmatpush1.bf16.msra.mxu0 %v4501_v3  ;;  %v4560_v3 = vcombine.high %v669_v58, %v673_v61  ;;  %v724_v61 = vld [vmem:[#allocation8 + $0x950] sm:$0xff] }
 0x274   :  { %4088 = vmatpush1.bf16.msra.mxu1 %v4503_v6  ;;  %3925 = vmatprep.subr.bf16.mxu0 %v4510_v8  ;;  %v676_v6 = vld [vmem:[#allocation8 + $0x7d0] sm:$0xff] }
 0x275   :  { %4089 = vmatprep.subr.bf16.mxu1 %v4512_v9  ;;  %v680_v8 = vld [vmem:[#allocation8 + $0x7f0] sm:$0xff]  ;;  %v677_v9 = vld [vmem:[#allocation8 + $0x7d8] sm:$0xff] }
 0x276   :  { %v4566_v17 = vcombine.high %v676_v6, %v680_v8  ;;  %v4565_v62 = vcombine.low %v676_v6, %v680_v8  ;;  %v4567_v22 = vcombine.low %v677_v9, %v681_v10 }
 0x277   :  { %3926 = vmatpush1.bf16.msra.mxu0 %v4509_v18  ;;  %v4568_v18 = vcombine.high %v677_v9, %v681_v10  ;;  %v732_v10 = vld [vmem:[#allocation8 + $0x990] sm:$0xff] }
 0x278   :  { %4090 = vmatpush1.bf16.msra.mxu1 %v4511_v19  ;;  %3927 = vmatprep.subr.bf16.mxu0 %v4518_v20  ;;  %v684_v19 = vld [vmem:[#allocation8 + $0x810] sm:$0xff] }
 0x279   :  { %4091 = vmatprep.subr.bf16.mxu1 %v4520_v21  ;;  %v688_v20 = vld [vmem:[#allocation8 + $0x830] sm:$0xff]  ;;  %v685_v21 = vld [vmem:[#allocation8 + $0x818] sm:$0xff] }
 0x27a   :  { %v4574_v23 = vcombine.high %v684_v19, %v688_v20  ;;  %v4575_v28 = vcombine.low %v685_v21, %v689_v7 }
 0x27b   :  { %3928 = vmatpush1.bf16.msra.mxu0 %v4517_v25  ;;  %v4576_v25 = vcombine.high %v685_v21, %v689_v7  ;;  %v740_v7 = vld [vmem:[#allocation8 + $0x9d0] sm:$0xff] }
 0x27c   :  { %4092 = vmatpush1.bf16.msra.mxu1 %v4519_v26  ;;  %3929 = vmatprep.subr.bf16.mxu0 %v4526_v46  ;;  %v692_v26 = vld [vmem:[#allocation8 + $0x850] sm:$0xff] }
 0x27d   :  { %4093 = vmatprep.subr.bf16.mxu1 %v4528_v14  ;;  %v696_v46 = vld [vmem:[#allocation8 + $0x870] sm:$0xff]  ;;  %v4573_v14 = vcombine.low %v684_v19, %v688_v20 }
 0x27e   :  { %v4582_v29 = vcombine.high %v692_v26, %v696_v46  ;;  %v4581_v4 = vcombine.low %v692_v26, %v696_v46 }
 0x27f   :  { %3930 = vmatpush1.bf16.msra.mxu0 %v4525_v30  ;;  %v700_v30 = vld [vmem:[#allocation8 + $0x890] sm:$0xff] }
 0x280   :  { %4094 = vmatpush1.bf16.msra.mxu1 %v4527_v31  ;;  %3931 = vmatprep.subr.bf16.mxu0 %v4534_v32  ;;  %v704_v31 = vld [vmem:[#allocation8 + $0x8b0] sm:$0xff]  ;;  %v4584_v32 = vcombine.high %v693_v27, %v697_v15 }
 0x281   :  { %4095 = vmatprep.subr.bf16.mxu1 %v4536_v33  ;;  %v701_v33 = vld [vmem:[#allocation8 + $0x898] sm:$0xff]  ;;  %v4590_v38 = vcombine.high %v700_v30, %v704_v31  ;;  %v4589_v50 = vcombine.low %v700_v30, %v704_v31  ;;  %v748_v27 = vld [vmem:[#allocation8 + $0xa10] sm:$0xff] }
 0x282   :  { %v752_v15 = vld [vmem:[#allocation8 + $0xa30] sm:$0xff] }
 0x283   :  { %3932 = vmatpush1.bf16.msra.mxu0 %v4533_v39  ;;  %v4592_v39 = vcombine.high %v701_v33, %v705_v35 }
 0x284   :  { %4096 = vmatpush1.bf16.msra.mxu1 %v4535_v57  ;;  %3933 = vmatprep.subr.bf16.mxu0 %v4542_v40  ;;  %v708_v57 = vld [vmem:[#allocation8 + $0x8d0] sm:$0xff] }
 0x285   :  { %4097 = vmatprep.subr.bf16.mxu1 %v4544_v42  ;;  %v712_v40 = vld [vmem:[#allocation8 + $0x8f0] sm:$0xff]  ;;  %v709_v42 = vld [vmem:[#allocation8 + $0x8d8] sm:$0xff] }
 0x286   :  { %v4598_v5 = vcombine.high %v708_v57, %v712_v40  ;;  %v4600_v52 = vcombine.high %v709_v42, %v713_v43  ;;  %v4599_v55 = vcombine.low %v709_v42, %v713_v43  ;;  %v764_v43 = vld [vmem:[#allocation8 + $0xa90] sm:$0xff] }
 0x287   :  { %3934 = vmatpush1.bf16.msra.mxu0 %v4541_v16  ;;  %v716_v16 = vld [vmem:[#allocation8 + $0x910] sm:$0xff] }
 0x288   :  { %4098 = vmatpush1.bf16.msra.mxu1 %v4543_v53  ;;  %3935 = vmatprep.subr.bf16.mxu0 %v4550_v44  ;;  %v720_v53 = vld [vmem:[#allocation8 + $0x930] sm:$0xff]  ;;  %v717_v44 = vld [vmem:[#allocation8 + $0x918] sm:$0xff] }
 0x289   :  { %4099 = vmatprep.subr.bf16.mxu1 %v4552_v54  ;;  %v721_v54 = vld [vmem:[#allocation8 + $0x938] sm:$0xff]  ;;  %v4606_v56 = vcombine.high %v716_v16, %v720_v53 }
 0x28a   :  { %v4608_v58 = vcombine.high %v717_v44, %v721_v54  ;;  %v4607_v6 = vcombine.low %v717_v44, %v721_v54  ;;  %v772_v54 = vld [vmem:[#allocation8 + $0xad0] sm:$0xff] }
 0x28b   :  { %3936 = vmatpush1.bf16.msra.mxu0 %v4549_v63  ;;  %v728_v63 = vld [vmem:[#allocation8 + $0x970] sm:$0xff] }
 0x28c   :  { %4100 = vmatpush1.bf16.msra.mxu1 %v4551_v0  ;;  %3937 = vmatprep.subr.bf16.mxu0 %v4558_v2  ;;  %v725_v0 = vld [vmem:[#allocation8 + $0x958] sm:$0xff]  ;;  %v4614_v8 = vcombine.high %v724_v61, %v728_v63 }
 0x28d   :  { %4101 = vmatprep.subr.bf16.mxu1 %v4560_v3  ;;  %v729_v2 = vld [vmem:[#allocation8 + $0x978] sm:$0xff]  ;;  %v4605_v3 = vcombine.low %v716_v16, %v720_v53 }
 0x28e   :  { %v4616_v9 = vcombine.high %v725_v0, %v729_v2  ;;  %v4615_v19 = vcombine.low %v725_v0, %v729_v2  ;;  %v780_v2 = vld [vmem:[#allocation8 + $0xb10] sm:$0xff] }
 0x28f   :  { %3938 = vmatpush1.bf16.msra.mxu0 %v4557_v11  ;;  %v736_v11 = vld [vmem:[#allocation8 + $0x9b0] sm:$0xff] }
 0x290   :  { %4102 = vmatpush1.bf16.msra.mxu1 %v4559_v12  ;;  %3939 = vmatprep.subr.bf16.mxu0 %v4566_v17  ;;  %v733_v12 = vld [vmem:[#allocation8 + $0x998] sm:$0xff]  ;;  %v4622_v20 = vcombine.high %v732_v10, %v736_v11 }
 0x291   :  { %4103 = vmatprep.subr.bf16.mxu1 %v4568_v18  ;;  %v737_v17 = vld [vmem:[#allocation8 + $0x9b8] sm:$0xff]  ;;  %v4613_v18 = vcombine.low %v724_v61, %v728_v63 }
 0x292   :  { %v4624_v21 = vcombine.high %v733_v12, %v737_v17  ;;  %v4623_v26 = vcombine.low %v733_v12, %v737_v17  ;;  %v788_v17 = vld [vmem:[#allocation8 + $0xb50] sm:$0xff] }
 0x293   :  { %3940 = vmatpush1.bf16.msra.mxu0 %v4565_v62  ;;  %v744_v62 = vld [vmem:[#allocation8 + $0x9f0] sm:$0xff] }
 0x294   :  { %4104 = vmatpush1.bf16.msra.mxu1 %v4567_v22  ;;  %3950 = vmatprep.subr.bf16.mxu0 %v4574_v23  ;;  %v741_v22 = vld [vmem:[#allocation8 + $0x9d8] sm:$0xff]  ;;  %v4630_v46 = vcombine.high %v740_v7, %v744_v62  ;;  %v4629_v30 = vcombine.low %v740_v7, %v744_v62 }
 0x295   :  { %4114 = vmatprep.subr.bf16.mxu1 %v4576_v25  ;;  %v745_v23 = vld [vmem:[#allocation8 + $0x9f8] sm:$0xff]  ;;  %v4621_v25 = vcombine.low %v732_v10, %v736_v11 }
 0x296   :  { %3942 = vmatmul.mubr.bf16.vlgmr.msra.gmra.mrb[12].mxu0 %v5219_v51  ;;  %v4631_v31 = vcombine.low %v741_v22, %v745_v23 }
 0x297   :  { %4106 = vmatmul.mubr.bf16.vlgmr.msra.gmra.mrb[12].mxu1 %v5219_v51  ;;  %3951 = vmatpush1.bf16.msra.mxu0 %v4573_v14  ;;  %v4591_v51 = vcombine.low %v701_v33, %v705_v35  ;;  %v4632_v14 = vcombine.high %v741_v22, %v745_v23  ;;  %v756_v35 = vld [vmem:[#allocation8 + $0xa50] sm:$0xff] }
 0x298   :  { %3982 = vmatprep.mubr.bf16.mxu0 %v5221_v60  ;;  %4115 = vmatpush1.bf16.msra.mxu1 %v4575_v28  ;;  %v749_v28 = vld [vmem:[#allocation8 + $0xa18] sm:$0xff]  ;;  %v796_v23 = vld [vmem:[#allocation8 + $0xb90] sm:$0xff] }
 0x299   :  { %4146 = vmatprep.mubr.bf16.mxu1 %v5221_v60  ;;  %3952 = vmatprep.subr.bf16.mxu0 %v4582_v29  ;;  %v4597_v60 = vcombine.low %v708_v57, %v712_v40  ;;  %v753_v29 = vld [vmem:[#allocation8 + $0xa38] sm:$0xff] }
 0x29a   :  { %4116 = vmatprep.subr.bf16.mxu1 %v4584_v32  ;;  %v4638_v32 = vcombine.high %v748_v27, %v752_v15  ;;  %v4640_v33 = vcombine.high %v749_v28, %v753_v29  ;;  %v4639_v57 = vcombine.low %v749_v28, %v753_v29  ;;  %v804_v29 = vld [vmem:[#allocation8 + $0xbd0] sm:$0xff] }
 0x29b   :  { %3953 = vmatpush1.bf16.msra.mxu0 %v4581_v4  ;;  %v760_v4 = vld [vmem:[#allocation8 + $0xa70] sm:$0xff] }
 0x29c   :  { %4117 = vmatpush1.bf16.msra.mxu1 %v4583_v37  ;;  %3954 = vmatprep.subr.bf16.mxu0 %v4590_v38  ;;  %v757_v37 = vld [vmem:[#allocation8 + $0xa58] sm:$0xff]  ;;  %v4646_v40 = vcombine.high %v756_v35, %v760_v4 }
 0x29d   :  { %4118 = vmatprep.subr.bf16.mxu1 %v4592_v39  ;;  %v761_v38 = vld [vmem:[#allocation8 + $0xa78] sm:$0xff]  ;;  %v4637_v39 = vcombine.low %v748_v27, %v752_v15 }
 0x29e   :  { %v4648_v42 = vcombine.high %v757_v37, %v761_v38  ;;  %v4647_v16 = vcombine.low %v757_v37, %v761_v38  ;;  %v812_v38 = vld [vmem:[#allocation8 + $0xc10] sm:$0xff] }
 0x29f   :  { %3955 = vmatpush1.bf16.msra.mxu0 %v4589_v50  ;;  %v768_v50 = vld [vmem:[#allocation8 + $0xab0] sm:$0xff] }
 0x2a0   :  { %4119 = vmatpush1.bf16.msra.mxu1 %v4591_v51  ;;  %3956 = vmatprep.subr.bf16.mxu0 %v4598_v5  ;;  %v765_v51 = vld [vmem:[#allocation8 + $0xa98] sm:$0xff]  ;;  %v4654_v53 = vcombine.high %v764_v43, %v768_v50 }
 0x2a1   :  { %4120 = vmatprep.subr.bf16.mxu1 %v4600_v52  ;;  %v769_v5 = vld [vmem:[#allocation8 + $0xab8] sm:$0xff]  ;;  %v4645_v52 = vcombine.low %v756_v35, %v760_v4 }
 0x2a2   :  { %v4656_v44 = vcombine.high %v765_v51, %v769_v5  ;;  %v4655_v61 = vcombine.low %v765_v51, %v769_v5  ;;  %v820_v5 = vld [vmem:[#allocation8 + $0xc50] sm:$0xff] }
 0x2a3   :  { %3957 = vmatpush1.bf16.msra.mxu0 %v4597_v60  ;;  %v776_v60 = vld [vmem:[#allocation8 + $0xaf0] sm:$0xff] }
 0x2a4   :  { %4121 = vmatpush1.bf16.msra.mxu1 %v4599_v55  ;;  %3958 = vmatprep.subr.bf16.mxu0 %v4606_v56  ;;  %v773_v55 = vld [vmem:[#allocation8 + $0xad8] sm:$0xff]  ;;  %v4662_v63 = vcombine.high %v772_v54, %v776_v60 }
 0x2a5   :  { %4122 = vmatprep.subr.bf16.mxu1 %v4608_v58  ;;  %v777_v56 = vld [vmem:[#allocation8 + $0xaf8] sm:$0xff]  ;;  %v4653_v58 = vcombine.low %v764_v43, %v768_v50 }
 0x2a6   :  { %v4664_v0 = vcombine.high %v773_v55, %v777_v56  ;;  %v4663_v10 = vcombine.low %v773_v55, %v777_v56  ;;  %v828_v55 = vld [vmem:[#allocation8 + $0xc90] sm:$0xff] }
 0x2a7   :  { %3959 = vmatpush1.bf16.msra.mxu0 %v4605_v3  ;;  %v784_v3 = vld [vmem:[#allocation8 + $0xb30] sm:$0xff] }
 0x2a8   :  { %4123 = vmatpush1.bf16.msra.mxu1 %v4607_v6  ;;  %3960 = vmatprep.subr.bf16.mxu0 %v4614_v8  ;;  %v781_v6 = vld [vmem:[#allocation8 + $0xb18] sm:$0xff]  ;;  %v4670_v11 = vcombine.high %v780_v2, %v784_v3  ;;  %v832_v56 = vld [vmem:[#allocation8 + $0xcb0] sm:$0xff] }
 0x2a9   :  { %4124 = vmatprep.subr.bf16.mxu1 %v4616_v9  ;;  %v785_v8 = vld [vmem:[#allocation8 + $0xb38] sm:$0xff]  ;;  %v4661_v9 = vcombine.low %v772_v54, %v776_v60 }
 0x2aa   :  { %v4672_v12 = vcombine.high %v781_v6, %v785_v8  ;;  %v4671_v7 = vcombine.low %v781_v6, %v785_v8  ;;  %v836_v8 = vld [vmem:[#allocation8 + $0xcd0] sm:$0xff] }
 0x2ab   :  { %3961 = vmatpush1.bf16.msra.mxu0 %v4613_v18  ;;  %v792_v18 = vld [vmem:[#allocation8 + $0xb70] sm:$0xff] }
 0x2ac   :  { %4125 = vmatpush1.bf16.msra.mxu1 %v4615_v19  ;;  %3962 = vmatprep.subr.bf16.mxu0 %v4622_v20  ;;  %v789_v19 = vld [vmem:[#allocation8 + $0xb58] sm:$0xff]  ;;  %v4678_v62 = vcombine.high %v788_v17, %v792_v18 }
 0x2ad   :  { %4126 = vmatprep.subr.bf16.mxu1 %v4624_v21  ;;  %v793_v20 = vld [vmem:[#allocation8 + $0xb78] sm:$0xff]  ;;  %v4669_v21 = vcombine.low %v780_v2, %v784_v3  ;;  %v4718_v3 = vcombine.high %v828_v55, %v832_v56 }
 0x2ae   :  { %v4680_v22 = vcombine.high %v789_v19, %v793_v20  ;;  %v4679_v27 = vcombine.low %v789_v19, %v793_v20  ;;  %v844_v19 = vld [vmem:[#allocation8 + $0xd10] sm:$0xff] }
 0x2af   :  { %3963 = vmatpush1.bf16.msra.mxu0 %v4621_v25  ;;  %v800_v25 = vld [vmem:[#allocation8 + $0xbb0] sm:$0xff] }
 0x2b0   :  { %4127 = vmatpush1.bf16.msra.mxu1 %v4623_v26  ;;  %3964 = vmatprep.subr.bf16.mxu0 %v4630_v46  ;;  %v797_v26 = vld [vmem:[#allocation8 + $0xb98] sm:$0xff]  ;;  %v4686_v15 = vcombine.high %v796_v23, %v800_v25  ;;  %v848_v20 = vld [vmem:[#allocation8 + $0xd30] sm:$0xff] }
 0x2b1   :  { %4128 = vmatprep.subr.bf16.mxu1 %v4632_v14  ;;  %v801_v46 = vld [vmem:[#allocation8 + $0xbb8] sm:$0xff]  ;;  %v4677_v14 = vcombine.low %v788_v17, %v792_v18 }
 0x2b2   :  { %v4688_v28 = vcombine.high %v797_v26, %v801_v46  ;;  %v4687_v35 = vcombine.low %v797_v26, %v801_v46  ;;  %v856_v26 = vld [vmem:[#allocation8 + $0xd70] sm:$0xff]  ;;  %v853_v46 = vld [vmem:[#allocation8 + $0xd58] sm:$0xff] }
 0x2b3   :  { %3965 = vmatpush1.bf16.msra.mxu0 %v4629_v30  ;;  %v808_v30 = vld [vmem:[#allocation8 + $0xbf0] sm:$0xff] }
 0x2b4   :  { %4129 = vmatpush1.bf16.msra.mxu1 %v4631_v31  ;;  %3966 = vmatprep.subr.bf16.mxu0 %v4638_v32  ;;  %v805_v31 = vld [vmem:[#allocation8 + $0xbd8] sm:$0xff]  ;;  %v4694_v4 = vcombine.high %v804_v29, %v808_v30 }
 0x2b5   :  { %4130 = vmatprep.subr.bf16.mxu1 %v4640_v33  ;;  %v809_v32 = vld [vmem:[#allocation8 + $0xbf8] sm:$0xff]  ;;  %v4685_v33 = vcombine.low %v796_v23, %v800_v25  ;;  %v852_v25 = vld [vmem:[#allocation8 + $0xd50] sm:$0xff] }
 0x2b6   :  { %v4696_v37 = vcombine.high %v805_v31, %v809_v32  ;;  %v4695_v43 = vcombine.low %v805_v31, %v809_v32  ;;  %v860_v31 = vld [vmem:[#allocation8 + $0xd90] sm:$0xff] }
 0x2b7   :  { %3967 = vmatpush1.bf16.msra.mxu0 %v4637_v39  ;;  %v816_v39 = vld [vmem:[#allocation8 + $0xc30] sm:$0xff] }
 0x2b8   :  { %4131 = vmatpush1.bf16.msra.mxu1 %v4639_v57  ;;  %3968 = vmatprep.subr.bf16.mxu0 %v4646_v40  ;;  %v813_v57 = vld [vmem:[#allocation8 + $0xc18] sm:$0xff]  ;;  %v4702_v50 = vcombine.high %v812_v38, %v816_v39  ;;  %v864_v32 = vld [vmem:[#allocation8 + $0xdb0] sm:$0xff] }
 0x2b9   :  { %4132 = vmatprep.subr.bf16.mxu1 %v4648_v42  ;;  %v817_v40 = vld [vmem:[#allocation8 + $0xc38] sm:$0xff]  ;;  %v4693_v42 = vcombine.low %v804_v29, %v808_v30  ;;  %v4742_v29 = vcombine.high %v852_v25, %v856_v26 }
 0x2ba   :  { %v4704_v51 = vcombine.high %v813_v57, %v817_v40  ;;  %v4703_v54 = vcombine.low %v813_v57, %v817_v40  ;;  %v4741_v40 = vcombine.low %v852_v25, %v856_v26 }
 0x2bb   :  { %3969 = vmatpush1.bf16.msra.mxu0 %v4645_v52  ;;  %v824_v52 = vld [vmem:[#allocation8 + $0xc70] sm:$0xff] }
 0x2bc   :  { %4133 = vmatpush1.bf16.msra.mxu1 %v4647_v16  ;;  %3970 = vmatprep.subr.bf16.mxu0 %v4654_v53  ;;  %v4701_v16 = vcombine.low %v812_v38, %v816_v39  ;;  %v821_v53 = vld [vmem:[#allocation8 + $0xc58] sm:$0xff]  ;;  %v4710_v60 = vcombine.high %v820_v5, %v824_v52  ;;  %v5276_v38 = vld [vmem:[#allocation11] sm:$0xff] }
 0x2bd   :  { %4134 = vmatprep.subr.bf16.mxu1 %v4656_v44  ;;  %v825_v44 = vld [vmem:[#allocation8 + $0xc78] sm:$0xff] }
 0x2be   :  { %v4711_v2 = vcombine.low %v821_v53, %v825_v44 }
 0x2bf   :  { %3971 = vmatpush1.bf16.msra.mxu0 %v4653_v58  ;;  %v4712_v58 = vcombine.high %v821_v53, %v825_v44  ;;  %v4209_v44 = vrot.slane %v5276_v38, %v5169_v45 }
 0x2c0   :  { %4135 = vmatpush1.bf16.msra.mxu1 %v4655_v61  ;;  %3972 = vmatprep.subr.bf16.mxu0 %v4662_v63  ;;  %v829_v61 = vld [vmem:[#allocation8 + $0xc98] sm:$0xff] }
 0x2c1   :  { %4136 = vmatprep.subr.bf16.mxu1 %v4664_v0  ;;  %v833_v63 = vld [vmem:[#allocation8 + $0xcb8] sm:$0xff]  ;;  %v4709_v0 = vcombine.low %v820_v5, %v824_v52  ;;  %v868_v52 = vld [vmem:[#allocation8 + $0xdd0] sm:$0xff] }
 0x2c2   :  { %v4720_v6 = vcombine.high %v829_v61, %v833_v63 }
 0x2c3   :  { %3973 = vmatpush1.bf16.msra.mxu0 %v4661_v9  ;;  %v840_v9 = vld [vmem:[#allocation8 + $0xcf0] sm:$0xff] }
 0x2c4   :  { %4137 = vmatpush1.bf16.msra.mxu1 %v4663_v10  ;;  %3974 = vmatprep.subr.bf16.mxu0 %v4670_v11  ;;  %v837_v10 = vld [vmem:[#allocation8 + $0xcd8] sm:$0xff]  ;;  %v4726_v17 = vcombine.high %v836_v8, %v840_v9 }
 0x2c5   :  { %4138 = vmatprep.subr.bf16.mxu1 %v4672_v12  ;;  %v841_v11 = vld [vmem:[#allocation8 + $0xcf8] sm:$0xff]  ;;  %v4717_v12 = vcombine.low %v828_v55, %v832_v56 }
 0x2c6   :  { %v4728_v18 = vcombine.high %v837_v10, %v841_v11  ;;  %v869_v56 = vld [vmem:[#allocation8 + $0xdd8] sm:$0xff] }
 0x2c7   :  { %3975 = vmatpush1.bf16.msra.mxu0 %v4669_v21  ;;  %v845_v21 = vld [vmem:[#allocation8 + $0xd18] sm:$0xff] }
 0x2c8   :  { %4139 = vmatpush1.bf16.msra.mxu1 %v4671_v7  ;;  %3976 = vmatprep.subr.bf16.mxu0 %v4678_v62  ;;  %v849_v7 = vld [vmem:[#allocation8 + $0xd38] sm:$0xff]  ;;  %v4727_v62 = vcombine.low %v837_v10, %v841_v11 }
 0x2c9   :  { %4140 = vmatprep.subr.bf16.mxu1 %v4680_v22  ;;  %v4734_v22 = vcombine.high %v844_v19, %v848_v20  ;;  %v4736_v23 = vcombine.high %v845_v21, %v849_v7 }
 0x2cb   :  { %3977 = vmatpush1.bf16.msra.mxu0 %v4677_v14  ;;  %v857_v14 = vld [vmem:[#allocation8 + $0xd78] sm:$0xff] }
 0x2cc   :  { %4141 = vmatpush1.bf16.msra.mxu1 %v4679_v27  ;;  %3978 = vmatprep.subr.bf16.mxu0 %v4686_v15  ;;  %v4733_v27 = vcombine.low %v844_v19, %v848_v20  ;;  %v5270_v15 = vld [vmem:[#allocation10] sm:$0xff]  ;;  %v4744_v30 = vcombine.high %v853_v46, %v857_v14  ;;  %v880_v19 = vld [vmem:[#allocation8 + $0xe30] sm:$0xff] }
 0x2cd   :  { %4142 = vmatprep.subr.bf16.mxu1 %v4688_v28  ;;  %v4735_v28 = vcombine.low %v845_v21, %v849_v7  ;;  %v947_v39 = vrot.slane %v5270_v15, %v5174_v47  ;;  %v955_v57 = vrot.slane %v5270_v15, %v5177_v48  ;;  %v877_v21 = vld [vmem:[#allocation8 + $0xe18] sm:$0xff] }
 0x2ce   :  { %v881_v7 = vld [vmem:[#allocation8 + $0xe38] sm:$0xff] }
 0x2cf   :  { %3979 = vmatpush1.bf16.msra.mxu0 %v4685_v33  ;;  %v943_v33 = vrot.slane %v5270_v15, %v5169_v45 }
 0x2d0   :  { %4143 = vmatpush1.bf16.msra.mxu1 %v4687_v35  ;;  %3980 = vmatprep.subr.bf16.mxu0 %v4694_v4  ;;  %v951_v35 = vrot.slane %v5270_v15, %v5208_v1  ;;  %v861_v4 = vld [vmem:[#allocation8 + $0xd98] sm:$0xff] }
 0x2d1   :  { %4144 = vmatprep.subr.bf16.mxu1 %v4696_v37  ;;  %v865_v37 = vld [vmem:[#allocation8 + $0xdb8] sm:$0xff] }
 0x2d2   :  { %v4752_v5 = vcombine.high %v861_v4, %v865_v37  ;;  %v4751_v45 = vcombine.low %v861_v4, %v865_v37 }
 0x2d3   :  { %3981 = vmatpush1.bf16.msra.mxu0 %v4693_v42  ;;  %v4743_v42 = vcombine.low %v853_v46, %v857_v14  ;;  %v4768_v14 = vcombine.high %v877_v21, %v881_v7 }
 0x2d4   :  { %4145 = vmatpush1.bf16.msra.mxu1 %v4695_v43  ;;  %3991 = vmatprep.subr.bf16.mxu0 %v4702_v50  ;;  %v4750_v43 = vcombine.high %v860_v31, %v864_v32 }
 0x2d5   :  { %4155 = vmatprep.subr.bf16.mxu1 %v4704_v51 }
 0x2d6   :  { %3983 = vmatmul.mubr.bf16.vlgmr.msra.gmra.mrb[12].mxu0 %v5239_v34 }
 0x2d7   :  { %4147 = vmatmul.mubr.bf16.vlgmr.msra.gmra.mrb[12].mxu1 %v5239_v34  ;;  %3992 = vmatpush1.bf16.msra.mxu0 %v4701_v16  ;;  %v4719_v34 = vcombine.low %v829_v61, %v833_v63  ;;  %v872_v16 = vld [vmem:[#allocation8 + $0xdf0] sm:$0xff]  ;;  %v4213_v63 = vrot.slane %v5276_v38, %v5174_v47 }
 0x2d8   :  { %4023 = vmatprep.mubr.bf16.mxu0 %v5241_v41  ;;  %4156 = vmatpush1.bf16.msra.mxu1 %v4703_v54  ;;  %v4758_v11 = vcombine.high %v868_v52, %v872_v16  ;;  %v876_v47 = vld [vmem:[#allocation8 + $0xe10] sm:$0xff] }
 0x2d9   :  { %4187 = vmatprep.mubr.bf16.mxu1 %v5241_v41  ;;  %3993 = vmatprep.subr.bf16.mxu0 %v4710_v60  ;;  %v4725_v41 = vcombine.low %v836_v8, %v840_v9  ;;  %v4766_v26 = vcombine.high %v876_v47, %v880_v19 }
 0x2da   :  { %4157 = vmatprep.subr.bf16.mxu1 %v4712_v58  ;;  %v873_v58 = vld [vmem:[#allocation8 + $0xdf8] sm:$0xff] }
 0x2db   :  { %3994 = vmatpush1.bf16.msra.mxu0 %v4709_v0  ;;  %v4759_v25 = vcombine.low %v869_v56, %v873_v58 }
 0x2dc   :  { %4158 = vmatpush1.bf16.msra.mxu1 %v4711_v2  ;;  %3995 = vmatprep.subr.bf16.mxu0 %v4718_v3 }
 0x2dd   :  { %4159 = vmatprep.subr.bf16.mxu1 %v4720_v6  ;;  %v4749_v6 = vcombine.low %v860_v31, %v864_v32 }
 0x2df   :  { %3996 = vmatpush1.bf16.msra.mxu0 %v4717_v12 }
 0x2e0   :  { %4160 = vmatpush1.bf16.msra.mxu1 %v4719_v34  ;;  %3997 = vmatprep.subr.bf16.mxu0 %v4726_v17  ;;  %v4217_v34 = vrot.slane %v5276_v38, %v5208_v1 }
 0x2e1   :  { %4161 = vmatprep.subr.bf16.mxu1 %v4728_v18  ;;  %v4760_v18 = vcombine.high %v869_v56, %v873_v58  ;;  %v908_v58 = vld [vmem:[#allocation8 + $0xf10] sm:$0xff] }
 0x2e3   :  { %3998 = vmatpush1.bf16.msra.mxu0 %v4725_v41 }
 0x2e4   :  { %4162 = vmatpush1.bf16.msra.mxu1 %v4727_v62  ;;  %3999 = vmatprep.subr.bf16.mxu0 %v4734_v22  ;;  %v4221_v22 = vrot.slane %v5276_v38, %v5177_v48  ;;  %v4767_v48 = vcombine.low %v877_v21, %v881_v7  ;;  %v929_v21 = vld [vmem:[#allocation8 + $0xfb8] sm:$0xff] }
 0x2e5   :  { %4163 = vmatprep.subr.bf16.mxu1 %v4736_v23  ;;  %v4757_v23 = vcombine.low %v868_v52, %v872_v16  ;;  %v900_v52 = vld [vmem:[#allocation8 + $0xed0] sm:$0xff] }
 0x2e6   :  { %v904_v16 = vld [vmem:[#allocation8 + $0xef0] sm:$0xff] }
 0x2e7   :  { %4000 = vmatpush1.bf16.msra.mxu0 %v4733_v27  ;;  %v884_v27 = vld [vmem:[#allocation8 + $0xe50] sm:$0xff] }
 0x2e8   :  { %4164 = vmatpush1.bf16.msra.mxu1 %v4735_v28  ;;  %4001 = vmatprep.subr.bf16.mxu0 %v4742_v29  ;;  %v888_v28 = vld [vmem:[#allocation8 + $0xe70] sm:$0xff]  ;;  %v885_v29 = vld [vmem:[#allocation8 + $0xe58] sm:$0xff] }
 0x2e9   :  { %v3697_v50 = vpop.f32.mrb[8].mxu0  ;;  %v3861_v51 = vpop.f32.mrb[8].mxu1  ;;  %4165 = vmatprep.subr.bf16.mxu1 %v4744_v30  ;;  %v889_v30 = vld [vmem:[#allocation8 + $0xe78] sm:$0xff] }
 0x2ea   :  { %v4827_v53 = vadd.f32 %v3697_v50, %v943_v33  ;;  %v4829_v54 = vadd.f32 %v3861_v51, %v951_v35  ;;  %v3699_v60 = vpop.f32.mrb[9].mxu0  ;;  %v3863_v55 = vpop.f32.mrb[9].mxu1  ;;  %v4765_v33 = vcombine.low %v876_v47, %v880_v19  ;;  %v4774_v35 = vcombine.high %v884_v27, %v888_v28  ;;  %v924_v47 = vld [vmem:[#allocation8 + $0xf90] sm:$0xff] }
 0x2eb   :  { %v4828_v61 = vadd.f32 %v3699_v60, %v947_v39  ;;  %v4830_v0 = vadd.f32 %v3863_v55, %v955_v57  ;;  %v3701_v2 = vpop.f32.mrb[10].mxu0  ;;  %v3865_v3 = vpop.f32.mrb[10].mxu1  ;;  %4002 = vmatpush1.bf16.msra.mxu0 %v4741_v40  ;;  %v4776_v37 = vcombine.high %v885_v29, %v889_v30  ;;  %v892_v39 = vld [vmem:[#allocation8 + $0xe90] sm:$0xff]  ;;  %v893_v40 = vld [vmem:[#allocation8 + $0xe98] sm:$0xff]  ;;  %v4775_v50 = vcombine.low %v885_v29, %v889_v30 }
 0x2ec   :  { %v4196_v8 = vmax.f32 %v4827_v53, 0.0  ;;  %4166 = vmatpush1.bf16.msra.mxu1 %v4743_v42  ;;  %v3702_v9 = vpop.f32.mrb[11].mxu0  ;;  %v3866_v10 = vpop.f32.mrb[11].mxu1  ;;  %4003 = vmatprep.subr.bf16.mxu0 %v4750_v43  ;;  %v4198_v12 = vmax.f32 %v4829_v54, 0.0  ;;  %v896_v57 = vld [vmem:[#allocation8 + $0xeb0] sm:$0xff]  ;;  %v897_v42 = vld [vmem:[#allocation8 + $0xeb8] sm:$0xff]  ;;  %v4773_v43 = vcombine.low %v884_v27, %v888_v28  ;;  %v4790_v55 = vcombine.high %v900_v52, %v904_v16 }
 0x2ed   :  { %v4197_v17 = vmax.f32 %v4828_v61, 0.0  ;;  %4167 = vmatprep.subr.bf16.mxu1 %v4752_v5  ;;  %v4199_v62 = vmax.f32 %v4830_v0, 0.0  ;;  %v4782_v51 = vcombine.high %v892_v39, %v896_v57  ;;  %v4784_v5 = vcombine.high %v893_v40, %v897_v42  ;;  %v901_v53 = vld [vmem:[#allocation8 + $0xed8] sm:$0xff]  ;;  %v912_v61 = vld [vmem:[#allocation8 + $0xf30] sm:$0xff] }
 0x2ee   :  { %v4246_v20 = vmul.f32 %v4209_v44, %v4196_v8  ;;  %v4248_v1 = vmul.f32 %v4217_v34, %v4198_v12  ;;  %v905_v44 = vld [vmem:[#allocation8 + $0xef8] sm:$0xff]  ;;  %v4781_v54 = vcombine.low %v892_v39, %v896_v57  ;;  %v4783_v60 = vcombine.low %v893_v40, %v897_v42  ;;  %v916_v9 = vld [vmem:[#allocation8 + $0xf50] sm:$0xff] }
 0x2ef   :  { %v4247_v41 = vmul.f32 %v4213_v63, %v4197_v17  ;;  %4004 = vmatpush1.bf16.msra.mxu0 %v4749_v6  ;;  %v4249_v31 = vmul.f32 %v4221_v22, %v4199_v62  ;;  %v4792_v56 = vcombine.high %v901_v53, %v905_v44  ;;  %v909_v63 = vld [vmem:[#allocation8 + $0xf18] sm:$0xff]  ;;  %v4789_v2 = vcombine.low %v900_v52, %v904_v16  ;;  %v920_v10 = vld [vmem:[#allocation8 + $0xf70] sm:$0xff] }
 0x2f0   :  { %4168 = vmatpush1.bf16.msra.mxu1 %v4751_v45  ;;  %4005 = vmatprep.subr.bf16.mxu0 %v4758_v11  ;;  %v913_v0 = vld [vmem:[#allocation8 + $0xf38] sm:$0xff]  ;;  %v4791_v3 = vcombine.low %v901_v53, %v905_v44  ;;  %v4798_v6 = vcombine.high %v908_v58, %v912_v61  ;;  %v4797_v12 = vcombine.low %v908_v58, %v912_v61  ;;  %v928_v19 = vld [vmem:[#allocation8 + $0xfb0] sm:$0xff] }
 0x2f1   :  { %v4254_v46 = vadd.f32 %v4247_v41, %v4246_v20  ;;  %4169 = vmatprep.subr.bf16.mxu1 %v4760_v18  ;;  %v4800_v8 = vcombine.high %v909_v63, %v913_v0  ;;  %v917_v45 = vld [vmem:[#allocation8 + $0xf58] sm:$0xff]  ;;  %v4799_v34 = vcombine.low %v909_v63, %v913_v0  ;;  %v4806_v17 = vcombine.high %v916_v9, %v920_v10 }
 0x2f2   :  { %v921_v11 = vld [vmem:[#allocation8 + $0xf78] sm:$0xff]  ;;  %v4805_v7 = vcombine.low %v916_v9, %v920_v10  ;;  %v4814_v62 = vcombine.high %v924_v47, %v928_v19  ;;  %v4225_v39 = vrot.slane %v5276_v38, %v5228_v49 }
 0x2f3   :  { %v4255_v32 = vadd.f32 %v4254_v46, %v4248_v1  ;;  %4006 = vmatpush1.bf16.msra.mxu0 %v4757_v23  ;;  %v4808_v18 = vcombine.high %v917_v45, %v921_v11  ;;  %v925_v20 = vld [vmem:[#allocation8 + $0xf98] sm:$0xff]  ;;  %v4807_v41 = vcombine.low %v917_v45, %v921_v11  ;;  %v932_v23 = vld [vmem:[#allocation8 + $0xfd0] sm:$0xff]  ;;  %v4813_v46 = vcombine.low %v924_v47, %v928_v19 }
 0x2f4   :  { %4170 = vmatpush1.bf16.msra.mxu1 %v4759_v25  ;;  %4007 = vmatprep.subr.bf16.mxu0 %v4766_v26  ;;  %v4816_v22 = vcombine.high %v925_v20, %v929_v21  ;;  %v936_v25 = vld [vmem:[#allocation8 + $0xff0] sm:$0xff]  ;;  %v933_v26 = vld [vmem:[#allocation8 + $0xfd8] sm:$0xff] }
 0x2f5   :  { %v5290_v4 = vadd.f32 %v4255_v32, %v4249_v31  ;;  %4171 = vmatprep.subr.bf16.mxu1 %v4768_v14  ;;  %v937_v1 = vld [vmem:[#allocation8 + $0xff8] sm:$0xff]  ;;  %v4815_v14 = vcombine.low %v925_v20, %v929_v21  ;;  %v4822_v27 = vcombine.high %v932_v23, %v936_v25  ;;  %v4821_v29 = vcombine.low %v932_v23, %v936_v25 }
 0x2f6   :  { %v4824_v28 = vcombine.high %v933_v26, %v937_v1  ;;  %v4823_v30 = vcombine.low %v933_v26, %v937_v1  ;;  %v959_v31 = vrot.slane %v5270_v15, %v5228_v49  ;;  %v967_v32 = vrot.slane %v5270_v15, %v5248_v36 }
 0x2f7   :  { %4008 = vmatpush1.bf16.msra.mxu0 %v4765_v33  ;;  %v963_v33 = vrot.slane %v5270_v15, %v5211_v13  ;;  %v4233_v49 = vrot.slane %v5276_v38, %v5248_v36 }
 0x2f8   :  { %4172 = vmatpush1.bf16.msra.mxu1 %v4767_v48  ;;  %4009 = vmatprep.subr.bf16.mxu0 %v4774_v35  ;;  %v971_v48 = vrot.slane %v5270_v15, %v5231_v59 }
 0x2f9   :  { %4173 = vmatprep.subr.bf16.mxu1 %v4776_v37 }
 0x2fb   :  { %4010 = vmatpush1.bf16.msra.mxu0 %v4773_v43  ;;  %v4229_v43 = vrot.slane %v5276_v38, %v5211_v13  ;;  %v4237_v13 = vrot.slane %v5276_v38, %v5231_v59 }
 0x2fc   :  { %4174 = vmatpush1.bf16.msra.mxu1 %v4775_v50  ;;  %4011 = vmatprep.subr.bf16.mxu0 %v4782_v51 }
 0x2fd   :  { %4175 = vmatprep.subr.bf16.mxu1 %v4784_v5 }
 0x2ff   :  { %4012 = vmatpush1.bf16.msra.mxu0 %v4781_v54 }
 0x300   :  { %4176 = vmatpush1.bf16.msra.mxu1 %v4783_v60  ;;  %4013 = vmatprep.subr.bf16.mxu0 %v4790_v55 }
 0x301   :  { %4177 = vmatprep.subr.bf16.mxu1 %v4792_v56 }
 0x303   :  { %4014 = vmatpush1.bf16.msra.mxu0 %v4789_v2 }
 0x304   :  { %4178 = vmatpush1.bf16.msra.mxu1 %v4791_v3  ;;  %4015 = vmatprep.subr.bf16.mxu0 %v4798_v6  ;;  %v4825_v6 = vld [vmem:[#allocation2] ss:$0 sm:$0xff] }
 0x305   :  { %4179 = vmatprep.subr.bf16.mxu1 %v4800_v8 }
 0x307   :  { %4016 = vmatpush1.bf16.msra.mxu0 %v4797_v12 }
 0x308   :  { %4180 = vmatpush1.bf16.msra.mxu1 %v4799_v34  ;;  %4017 = vmatprep.subr.bf16.mxu0 %v4806_v17 }
 0x309   :  { %4181 = vmatprep.subr.bf16.mxu1 %v4808_v18 }
 0x30b   :  { %4018 = vmatpush1.bf16.msra.mxu0 %v4805_v7 }
 0x30c   :  { %4182 = vmatpush1.bf16.msra.mxu1 %v4807_v41  ;;  %4019 = vmatprep.subr.bf16.mxu0 %v4814_v62 }
 0x30d   :  { %4183 = vmatprep.subr.bf16.mxu1 %v4816_v22 }
 0x30f   :  { %4020 = vmatpush1.bf16.msra.mxu0 %v4813_v46 }
 0x310   :  { %4184 = vmatpush1.bf16.msra.mxu1 %v4815_v14  ;;  %4021 = vmatprep.subr.bf16.mxu0 %v4822_v27 }
 0x311   :  { %4185 = vmatprep.subr.bf16.mxu1 %v4824_v28 }
 0x313   :  { %4022 = vmatpush1.bf16.msra.mxu0 %v4821_v29 }
 0x314   :  { %4186 = vmatpush1.bf16.msra.mxu1 %v4823_v30 }
 0x316   :  { %4024 = vmatmul.mubr.bf16.vlgmr.msra.gmra.mrb[12].mxu0 %v5252_v24 }
 0x317   :  { %4188 = vmatmul.mubr.bf16.vlgmr.msra.gmra.mrb[12].mxu1 %v5252_v24 }
 0x3e9   :  { %v4025_v35 = vpop.f32.mrb[12].mxu0 }
 0x3ea   :  { %v4831_v37 = vadd.f32 %v4025_v35, %v959_v31  ;;  %v4189_v57 = vpop.f32.mrb[12].mxu1  ;;  %v4027_v40 = vpop.f32.mrb[13].mxu0 }
 0x3eb   :  { %v4833_v24 = vadd.f32 %v4189_v57, %v967_v32  ;;  %v4832_v42 = vadd.f32 %v4027_v40, %v963_v33  ;;  %v4191_v50 = vpop.f32.mrb[13].mxu1  ;;  %v4029_v51 = vpop.f32.mrb[14].mxu0 }
 0x3ec   :  { %v4200_v5 = vmax.f32 %v4831_v37, 0.0  ;;  %v4834_v52 = vadd.f32 %v4191_v50, %v971_v48  ;;  %v4193_v16 = vpop.f32.mrb[14].mxu1  ;;  %v4030_v53 = vpop.f32.mrb[15].mxu0 }
 0x3ed   :  { %v4201_v44 = vmax.f32 %v4832_v42, 0.0  ;;  %v4194_v15 = vpop.f32.mrb[15].mxu1  ;;  %v4202_v60 = vmax.f32 %v4833_v24, 0.0 }
 0x3ee   :  { %v4250_v54 = vmul.f32 %v4225_v39, %v4200_v5  ;;  %v4203_v58 = vmax.f32 %v4834_v52, 0.0 }
 0x3ef   :  { %v4251_v55 = vmul.f32 %v4229_v43, %v4201_v44  ;;  %v4252_v61 = vmul.f32 %v4233_v49, %v4202_v60 }
 0x3f0   :  { %v4257_v56 = vadd.f32 %v5290_v4, %v4250_v54  ;;  %v4253_v0 = vmul.f32 %v4237_v13, %v4203_v58 }
 0x3f2   :  { %v4258_v63 = vadd.f32 %v4257_v56, %v4251_v55 }
 0x3f4   :  { %v4259_v2 = vadd.f32 %v4258_v63, %v4252_v61 }
 0x3f6   :  { %v4260_v3 = vadd.f32 %v4259_v2, %v4253_v0 }
 0x3f8   :  { %4261 = vadd.xlane.f32.xlu0 %v4260_v3 }
 0x485   :  { %v4262_v8 = vpop.xlane.xlu0 %4261 }
 0x486   :  { %v4270_v9 = vadd.f32 %v4825_v6, %v4262_v8 }
 0x488   :  { %v4826_v10 = vclamps-f32 %v4270_v9, 30.0 }
 0x48a   :  { %v4273_v45 = vsub.f32 0.0, %v4826_v10 }
 0x48c   :  { %v4274_v11 = vmul.f32 1.442695, %v4273_v45 }
 0x48e   :  { %4893 = vpow2.f32 %v4274_v11 }
 0x498   :  { %v4894_v36 = vpop.eup %4893 }
 0x499   :  { %v4276_v12 = vadd.f32 1.0, %v4894_v36 }
 0x49b   :  { %4895 = vrcp.f32 %v4276_v12 }
 0x4a5   :  { %v4896_v4 = vpop.eup %4895 }
 0x4a6   :  { %4280 = vperm.xlu0 %4892, %v4896_v4  }
 0x525   :  { %v4281_v34 = vpop.permute.xlu0 %4280 }
 0x526   :  { %v4283_v59 = vpack.c.bf16 %v4281_v34, %v4281_v34 }
 0x528   :  { %4284 = vst [vmem:[%s5321_s7] sm:$0xf] %v4283_v59 }
 0x529   :  { %4289 = vsyncpa [#allocation4], 1 }
 0x52a   :  { %4290 = vsyncpa [#allocation6], 1 }
 0x52b   :  { %4291 = vsyncpa [#allocation9], 1 }
 0x52c   :  { %4292 = vsyncpa [#allocation12], 1 }

</bundles_post_ra>
